<compile_context>
chip_gen: v7x
topology: tpu7x:2x2x1
jax: 0.10.0
libtpu: 0.0.40
codegen_flags: <defaults>
</compile_context>

<pallas_src>
import functools

import jax
import jax.numpy as jnp
from jax import lax
from jax.experimental import pallas as pl
from jax.experimental.pallas import tpu as pltpu
import numpy as np


def _attention_kernel(x_ref, wq_ref, bq_ref, wk_ref, bk_ref, wv_ref, bv_ref,
                      wp_ref, bp_ref, *rest,
                      num_heads, tq, kv_chunk, n_valid, return_attn):
    # x_ref    : (1, N_pad, C)  full (padded) sequence for this batch row
    # wq_ref   : (C, C)         W_q^T with the head_dim**-0.5 scale folded in
    # wk/wv_ref: (C, C)         W_k^T / W_v^T
    # wp_ref   : (H, D, C)      W_proj^T, head-major
    # b*_ref   : (1, C) f32     biases (bq pre-scaled)
    # out_ref  : (1, TQ, C)
    # attn_ref : (1, H, TQ, N_pad)   (only when return_attn)
    # scratch  : q (TQ, C), k (N_pad, C), v (N_pad, C), acc (TQ, C) f32
    if return_attn:
        out_ref, attn_ref, q_scr, k_scr, v_scr, acc_scr = rest
    else:
        out_ref, q_scr, k_scr, v_scr, acc_scr = rest
        attn_ref = None

    n_pad, C = k_scr.shape
    H = num_heads
    D = C // H
    qi = pl.program_id(1)

    # ---- once per batch row: K / V projection, chunked over rows ------------
    # Chunking keeps the f32 matmul temporaries at (kv_chunk, C) instead of a
    # full (N, 3C) slab (critical on v7x's 64 MiB VMEM).
    @pl.when(qi == 0)
    def _():
        for c in range(n_pad // kv_chunk):
            lo = c * kv_chunk
            x_c = x_ref[0, lo:lo + kv_chunk, :]
            k_c = jnp.dot(x_c, wk_ref[...],
                          preferred_element_type=jnp.float32) + bk_ref[...]
            v_c = jnp.dot(x_c, wv_ref[...],
                          preferred_element_type=jnp.float32) + bv_ref[...]
            k_scr[lo:lo + kv_chunk, :] = k_c.astype(k_scr.dtype)
            v_scr[lo:lo + kv_chunk, :] = v_c.astype(v_scr.dtype)

    # ---- per-step: project only the current TQ query rows -------------------
    row0 = pl.multiple_of(qi * tq, tq)
    x_rows = x_ref[0, pl.ds(row0, tq), :]
    q = jnp.dot(x_rows, wq_ref[...],
                preferred_element_type=jnp.float32) + bq_ref[...]
    q_scr[...] = q.astype(q_scr.dtype)      # already scaled by head_dim**-0.5

    # Mask padded key columns (only emitted when padding was actually added).
    if n_valid < n_pad:
        key_ids = lax.broadcasted_iota(jnp.int32, (1, n_pad), 1)
        key_mask = jnp.where(key_ids < n_valid, 0.0, -1e30).astype(jnp.float32)
    else:
        key_mask = None

    acc_scr[...] = jnp.zeros_like(acc_scr)

    # TODO(synk): head-major (H, N, D) scratch + a single batched dot_general
    # (or a fori_loop over heads) would remove the 64-lane slice reads and
    # bound the s/p live ranges; kept as static slices for lowering safety.
    for h in range(H):
        lo, hi = h * D, (h + 1) * D
        qh = q_scr[:, lo:hi]                                     # (TQ, D)
        kh = k_scr[:, lo:hi]                                     # (N_pad, D)
        vh = v_scr[:, lo:hi]                                     # (N_pad, D)

        # (q * scale) . k^T without materializing a transpose.
        s = lax.dot_general(qh, kh, (((1,), (1,)), ((), ())),
                            preferred_element_type=jnp.float32)  # (TQ, N_pad)
        if key_mask is not None:
            s = s + key_mask
        s = s - jnp.max(s, axis=-1, keepdims=True)
        p = jnp.exp(s)
        denom = jnp.sum(p, axis=-1, keepdims=True)
        inv = pl.reciprocal(denom, approx=True)
        inv = inv * (2.0 - denom * inv)       # one Newton step -> ~f32 exact
        p = p * inv

        if return_attn:
            attn_ref[0, h] = p.astype(attn_ref.dtype)

        oh = jnp.dot(p.astype(vh.dtype), vh,
                     preferred_element_type=jnp.float32)         # (TQ, D)
        # Per-head contribution to the output projection (head-major W_proj^T).
        acc_scr[...] += jnp.dot(oh.astype(wp_ref.dtype), wp_ref[h],
                                preferred_element_type=jnp.float32)

    out_ref[0] = (acc_scr[...] + bp_ref[...]).astype(out_ref.dtype)


def _round_up(x, m):
    return ((x + m - 1) // m) * m


def _vmem_capacity_bytes():
    """Physical VMEM per TensorCore (v7x 64 MiB, v5e/v6e 128 MiB)."""
    try:
        info = pltpu.get_tpu_info()
        cap = getattr(info, "vmem_capacity_bytes", None)
        if cap:
            return int(cap)
    except Exception:
        pass
    return 64 * 1024 * 1024   # conservative fallback


def _pick_row_chunk(n_pad):
    for cand in (512, 256, 128):
        if n_pad % cand == 0 and n_pad > cand:
            return cand
    return n_pad


def attention_forward(x, w_qkv, w_proj, b_proj, num_heads, b_qkv=None,
                      compute_dtype=None, attn_dtype=None, return_attn=True):
    """Attention.forward.

    x: (B, N, C); w_qkv: (3C, C); b_qkv: (3C,) or None; w_proj: (C, C);
    b_proj: (C,).  Returns (out (B, N, C), attn (B, H, N, N) or None).
    Pass attn_dtype=jnp.bfloat16 (or return_attn=False) to cut / drop the
    dominant B*H*N*N HBM writeback; compute_dtype=jnp.bfloat16 for MXU rate.
    """
    B, N, C = x.shape
    H = num_heads
    D = C // H
    scale = float(D) ** (-0.5)
    if compute_dtype is None:
        compute_dtype = x.dtype
    if attn_dtype is None:
        attn_dtype = x.dtype

    # ---- pad N so the query axis tiles (real TimeSformer N = T*196 + 1) -----
    n_pad = _round_up(N, 128) if N > 128 else _round_up(N, 8)
    x_in = x.astype(compute_dtype)
    if n_pad != N:
        x_in = jnp.pad(x_in, ((0, 0), (0, n_pad - N), (0, 0)))

    kv_chunk = _pick_row_chunk(n_pad)

    # ---- host-side weight prep (scale folded into the q path) ---------------
    w = w_qkv.astype(jnp.float32)
    wq = (jnp.transpose(w[:C]) * scale).astype(compute_dtype)          # (C, C)
    wk = jnp.transpose(w[C:2 * C]).astype(compute_dtype)               # (C, C)
    wv = jnp.transpose(w[2 * C:]).astype(compute_dtype)                # (C, C)
    b = (jnp.zeros((3 * C,), jnp.float32) if b_qkv is None
         else b_qkv.astype(jnp.float32))
    bq = (b[:C] * scale).reshape(1, C)
    bk = b[C:2 * C].reshape(1, C)
    bv = b[2 * C:].reshape(1, C)
    wp = (jnp.transpose(w_proj.astype(jnp.float32))
          .reshape(H, D, C).astype(compute_dtype))                     # (H, D, C)
    bp = b_proj.astype(jnp.float32).reshape(1, C)

    cd_sz = jnp.dtype(compute_dtype).itemsize
    io_sz = jnp.dtype(x.dtype).itemsize
    at_sz = jnp.dtype(attn_dtype).itemsize
    vmem_cap = _vmem_capacity_bytes()

    def vmem_est(tq):
        est = 2 * n_pad * C * cd_sz                 # x block (double buffered)
        est += 4 * C * C * cd_sz + 4 * C * 4        # resident weights + biases
        est += 2 * n_pad * C * cd_sz                # k / v scratch
        est += tq * C * cd_sz + tq * C * 4          # q scratch + f32 accumulator
        est += 2 * kv_chunk * C * 4                 # f32 K/V chunk temporaries
        est += 3 * tq * n_pad * 4                   # f32 score/prob temporaries
        est += 2 * tq * C * io_sz                   # out block (double buffered)
        if return_attn:
            est += 2 * H * tq * n_pad * at_sz       # attn block (double buffered)
        return est

    # ---- generation-aware query tile -----------------------------------------
    if n_pad <= 128:
        tq = n_pad
    else:
        cands = [t for t in (512, 256, 128) if n_pad % t == 0]
        tq = cands[-1]
        for t in cands:                            # prefer the biggest that fits
            if vmem_est(t) <= 0.7 * vmem_cap:
                tq = t
                break
    nq = n_pad // tq
    grid = (B, nq)

    kernel = functools.partial(_attention_kernel, num_heads=H, tq=tq,
                               kv_chunk=kv_chunk, n_valid=N,
                               return_attn=return_attn)

    out_shape = [jax.ShapeDtypeStruct((B, n_pad, C), x.dtype)]
    out_specs = [pl.BlockSpec((1, tq, C), lambda b_, qi: (b_, qi, 0))]
    if return_attn:
        out_shape.append(jax.ShapeDtypeStruct((B, H, n_pad, n_pad), attn_dtype))
        out_specs.append(
            pl.BlockSpec((1, H, tq, n_pad), lambda b_, qi: (b_, 0, qi, 0)))

    # Always raise the scoped VMEM limit from the estimate (v5e defaults to only
    # 16 MiB); clamp below physical capacity (v7x 64 MiB, v6e/v5e 128 MiB).
    vmem_limit = int(max(32 * 1024 * 1024,
                         min(vmem_est(tq) * 1.3, 0.9 * vmem_cap)))

    results = pl.pallas_call(
        kernel,
        out_shape=tuple(out_shape),
        grid_spec=pltpu.PrefetchScalarGridSpec(
            num_scalar_prefetch=0,
            grid=grid,
            in_specs=[
                pl.BlockSpec((1, n_pad, C), lambda b_, qi: (b_, 0, 0)),  # x (resident over qi)
                pl.BlockSpec((C, C), lambda b_, qi: (0, 0)),             # W_q^T * scale
                pl.BlockSpec((1, C), lambda b_, qi: (0, 0)),             # b_q * scale
                pl.BlockSpec((C, C), lambda b_, qi: (0, 0)),             # W_k^T
                pl.BlockSpec((1, C), lambda b_, qi: (0, 0)),             # b_k
                pl.BlockSpec((C, C), lambda b_, qi: (0, 0)),             # W_v^T
                pl.BlockSpec((1, C), lambda b_, qi: (0, 0)),             # b_v
                pl.BlockSpec((H, D, C), lambda b_, qi: (0, 0, 0)),       # W_proj^T head-major
                pl.BlockSpec((1, C), lambda b_, qi: (0, 0)),             # b_proj
            ],
            out_specs=out_specs,
            scratch_shapes=[
                pltpu.VMEM((tq, C), compute_dtype),      # q rows (pre-scaled)
                pltpu.VMEM((n_pad, C), compute_dtype),   # k
                pltpu.VMEM((n_pad, C), compute_dtype),   # v
                pltpu.VMEM((tq, C), jnp.float32),        # output-proj accumulator
            ],
        ),
        compiler_params=pltpu.CompilerParams(
            dimension_semantics=("parallel", "arbitrary"),
            vmem_limit_bytes=vmem_limit,
        ),
    )(x_in, wq, bq, wk, bk, wv, bv, wp, bp)

    out = results[0]
    if n_pad != N:
        out = out[:, :N]
    if not return_attn:
        return out, None
    attn = results[1]
    if n_pad != N:
        attn = attn[:, :, :N, :N]
    return out, attn


def attention_reference(x, w_qkv, w_proj, b_proj, num_heads, b_qkv=None):
    """Pure-JAX reference mirroring the PyTorch forward."""
    B, N, C = x.shape
    H = num_heads
    D = C // H
    qkv = jnp.einsum('bnc,oc->bno', x, w_qkv)                     # (B, N, 3C)
    if b_qkv is not None:
        qkv = qkv + b_qkv
    qkv = qkv.reshape(B, N, 3, H, D).transpose(2, 0, 3, 1, 4)     # (3, B, H, N, D)
    q, k, v = qkv[0], qkv[1], qkv[2]
    scale = float(D) ** (-0.5)
    attn = jnp.einsum('bhnd,bhmd->bhnm', q * scale, k)
    attn = jax.nn.softmax(attn, axis=-1)
    y = jnp.einsum('bhnm,bhmd->bhnd', attn, v)
    y = y.transpose(0, 2, 1, 3).reshape(B, N, C)
    out = jnp.einsum('bnc,oc->bno', y, w_proj) + b_proj
    return out, attn


if __name__ == "__main__":
    key = jax.random.PRNGKey(0)

    # ---- config 1: small shapes, no-padding path -----------------------------
    B, N, C, H = 2, 16, 32, 4    # head_dim D = 8
    k1, k2, k3, k4, k5 = jax.random.split(key, 5)
    x = jax.random.normal(k1, (B, N, C), dtype=jnp.float32)
    w_qkv = 0.05 * jax.random.normal(k2, (3 * C, C), dtype=jnp.float32)
    b_qkv = 0.05 * jax.random.normal(k5, (3 * C,), dtype=jnp.float32)  # qkv_bias=True
    w_proj = 0.05 * jax.random.normal(k3, (C, C), dtype=jnp.float32)
    b_proj = 0.05 * jax.random.normal(k4, (C,), dtype=jnp.float32)

    out, attn = attention_forward(x, w_qkv, w_proj, b_proj, num_heads=H, b_qkv=b_qkv)
    out = jax.block_until_ready(out)
    attn = jax.block_until_ready(attn)
    out_r, attn_r = attention_reference(x, w_qkv, w_proj, b_proj, num_heads=H, b_qkv=b_qkv)
    np.testing.assert_allclose(np.asarray(out), np.asarray(out_r), rtol=2e-3, atol=2e-3)
    np.testing.assert_allclose(np.asarray(attn), np.asarray(attn_r), rtol=2e-3, atol=2e-3)

    # ---- config 2: odd N (real TimeSformer is T*196+1) -> pad + mask + tiles -
    kk = jax.random.split(jax.random.PRNGKey(1), 5)
    B2, N2, C2, H2 = 2, 300, 32, 4          # pads to 384 -> TQ=128, NQ=3
    x2 = jax.random.normal(kk[0], (B2, N2, C2), dtype=jnp.float32)
    w_qkv2 = 0.05 * jax.random.normal(kk[1], (3 * C2, C2), dtype=jnp.float32)
    b_qkv2 = 0.05 * jax.random.normal(kk[2], (3 * C2,), dtype=jnp.float32)
    w_proj2 = 0.05 * jax.random.normal(kk[3], (C2, C2), dtype=jnp.float32)
    b_proj2 = 0.05 * jax.random.normal(kk[4], (C2,), dtype=jnp.float32)

    out2, attn2 = attention_forward(x2, w_qkv2, w_proj2, b_proj2, num_heads=H2, b_qkv=b_qkv2)
    out2 = jax.block_until_ready(out2)
    attn2 = jax.block_until_ready(attn2)
    out2_r, attn2_r = attention_reference(x2, w_qkv2, w_proj2, b_proj2, num_heads=H2,
                                          b_qkv=b_qkv2)
    np.testing.assert_allclose(np.asarray(out2), np.asarray(out2_r), rtol=2e-3, atol=2e-3)
    np.testing.assert_allclose(np.asarray(attn2), np.asarray(attn2_r), rtol=2e-3, atol=2e-3)

    # ---- config 2, attn dropped entirely (MXU-bound path) --------------------
    out3, _ = attention_forward(x2, w_qkv2, w_proj2, b_proj2, num_heads=H2,
                                b_qkv=b_qkv2, return_attn=False)
    out3 = jax.block_until_ready(out3)
    np.testing.assert_allclose(np.asarray(out3), np.asarray(out2_r), rtol=2e-3, atol=2e-3)

    # ---- config 2, bf16 attention writeback (halved HBM traffic) -------------
    out4, attn4 = attention_forward(x2, w_qkv2, w_proj2, b_proj2, num_heads=H2,
                                    b_qkv=b_qkv2, attn_dtype=jnp.bfloat16)
    attn4 = jax.block_until_ready(attn4)
    np.testing.assert_allclose(np.asarray(attn4.astype(jnp.float32)),
                               np.asarray(attn2_r), rtol=2e-2, atol=2e-2)

    print("KERNEL_OK")
</pallas_src>

<mosaic_0001>
module attributes {stable_mosaic.version = 11 : i64} {
  func.func @_attention_kernel(%arg0: i32, %arg1: i32, %arg2: memref<1x16x32xf32, #tpu.memory_space<vmem>>, %arg3: memref<32x32xf32, #tpu.memory_space<vmem>>, %arg4: memref<1x32xf32, #tpu.memory_space<vmem>>, %arg5: memref<32x32xf32, #tpu.memory_space<vmem>>, %arg6: memref<1x32xf32, #tpu.memory_space<vmem>>, %arg7: memref<32x32xf32, #tpu.memory_space<vmem>>, %arg8: memref<1x32xf32, #tpu.memory_space<vmem>>, %arg9: memref<4x8x32xf32, #tpu.memory_space<vmem>>, %arg10: memref<1x32xf32, #tpu.memory_space<vmem>>, %arg11: memref<1x16x32xf32, #tpu.memory_space<vmem>>, %arg12: memref<1x4x16x16xf32, #tpu.memory_space<vmem>>, %arg13: memref<16x32xf32, #tpu.memory_space<vmem>>, %arg14: memref<16x32xf32, #tpu.memory_space<vmem>>, %arg15: memref<16x32xf32, #tpu.memory_space<vmem>>, %arg16: memref<16x32xf32, #tpu.memory_space<vmem>>) attributes {dimension_semantics = [#tpu.dimension_semantics<parallel>, #tpu.dimension_semantics<arbitrary>], iteration_bounds = array<i64: 2, 1>, scalar_prefetch = 0 : i64, scratch_operands = 4 : i64, tpu.core_type = #tpu.core_type<tc>, window_params = [{transform_indices = @transform_0, window_bounds = array<i64: 1, 16, 32>}, {pipeline_mode = #tpu.pipeline_mode<synchronous>, transform_indices = @transform_1, window_bounds = array<i64: 32, 32>}, {pipeline_mode = #tpu.pipeline_mode<synchronous>, transform_indices = @transform_2, window_bounds = array<i64: 1, 32>}, {pipeline_mode = #tpu.pipeline_mode<synchronous>, transform_indices = @transform_3, window_bounds = array<i64: 32, 32>}, {pipeline_mode = #tpu.pipeline_mode<synchronous>, transform_indices = @transform_4, window_bounds = array<i64: 1, 32>}, {pipeline_mode = #tpu.pipeline_mode<synchronous>, transform_indices = @transform_5, window_bounds = array<i64: 32, 32>}, {pipeline_mode = #tpu.pipeline_mode<synchronous>, transform_indices = @transform_6, window_bounds = array<i64: 1, 32>}, {pipeline_mode = #tpu.pipeline_mode<synchronous>, transform_indices = @transform_7, window_bounds = array<i64: 4, 8, 32>}, {pipeline_mode = #tpu.pipeline_mode<synchronous>, transform_indices = @transform_8, window_bounds = array<i64: 1, 32>}, {transform_indices = @transform_9, window_bounds = array<i64: 1, 16, 32>}, {transform_indices = @transform_10, window_bounds = array<i64: 1, 4, 16, 16>}]} {
    %c0_i32 = arith.constant 0 : i32
    %0 = arith.cmpi eq, %arg1, %c0_i32 : i32
    %1 = arith.extui %0 : i1 to i32
    %c0_i32_0 = arith.constant 0 : i32
    %2 = arith.cmpi ne, %1, %c0_i32_0 : i32
    scf.if %2 {
      %c0_104 = arith.constant 0 : index
      %c0_105 = arith.constant 0 : index
      %c0_106 = arith.constant 0 : index
      %135 = vector.load %arg2[%c0_104, %c0_105, %c0_106] : memref<1x16x32xf32, #tpu.memory_space<vmem>>, vector<1x16x32xf32>
      %136 = vector.shape_cast %135 : vector<1x16x32xf32> to vector<16x32xf32>
      %c0_107 = arith.constant 0 : index
      %c0_108 = arith.constant 0 : index
      %137 = vector.load %arg5[%c0_107, %c0_108] : memref<32x32xf32, #tpu.memory_space<vmem>>, vector<32x32xf32>
      %cst_109 = arith.constant dense<0.000000e+00> : vector<16x32xf32>
      %138 = tpu.matmul %136, %137, %cst_109 {dimension_numbers = #tpu.dot_dimension_numbers<[1], [0], [0], [1], [0, 0, 1, 1], [], []>} : vector<16x32xf32>, vector<32x32xf32>, vector<16x32xf32> -> vector<16x32xf32>
      %c0_110 = arith.constant 0 : index
      %c0_111 = arith.constant 0 : index
      %139 = vector.load %arg6[%c0_110, %c0_111] : memref<1x32xf32, #tpu.memory_space<vmem>>, vector<1x32xf32>
      %140 = vector.broadcast %139 : vector<1x32xf32> to vector<16x32xf32>
      %141 = arith.addf %138, %140 : vector<16x32xf32>
      %c0_112 = arith.constant 0 : index
      %c0_113 = arith.constant 0 : index
      %142 = vector.load %arg7[%c0_112, %c0_113] : memref<32x32xf32, #tpu.memory_space<vmem>>, vector<32x32xf32>
      %cst_114 = arith.constant dense<0.000000e+00> : vector<16x32xf32>
      %143 = tpu.matmul %136, %142, %cst_114 {dimension_numbers = #tpu.dot_dimension_numbers<[1], [0], [0], [1], [0, 0, 1, 1], [], []>} : vector<16x32xf32>, vector<32x32xf32>, vector<16x32xf32> -> vector<16x32xf32>
      %c0_115 = arith.constant 0 : index
      %c0_116 = arith.constant 0 : index
      %144 = vector.load %arg8[%c0_115, %c0_116] : memref<1x32xf32, #tpu.memory_space<vmem>>, vector<1x32xf32>
      %145 = vector.broadcast %144 : vector<1x32xf32> to vector<16x32xf32>
      %146 = arith.addf %143, %145 : vector<16x32xf32>
      %c0_117 = arith.constant 0 : index
      %c0_118 = arith.constant 0 : index
      %147 = vector.load %arg14[%c0_117, %c0_118] : memref<16x32xf32, #tpu.memory_space<vmem>>, vector<16x32xf32>
      tpu.vector_store %arg14[%c0_117, %c0_118], %141 {strides = array<i32>} : memref<16x32xf32, #tpu.memory_space<vmem>>, vector<16x32xf32>,
      %c0_119 = arith.constant 0 : index
      %c0_120 = arith.constant 0 : index
      %148 = vector.load %arg15[%c0_119, %c0_120] : memref<16x32xf32, #tpu.memory_space<vmem>>, vector<16x32xf32>
      tpu.vector_store %arg15[%c0_119, %c0_120], %146 {strides = array<i32>} : memref<16x32xf32, #tpu.memory_space<vmem>>, vector<16x32xf32>,
    } else {
    }
    %c16_i32 = arith.constant 16 : i32
    %3 = arith.muli %arg1, %c16_i32 : i32
    %4 = tpu.assume_multiple %3, 16 : i32
    %c0 = arith.constant 0 : index
    %5 = arith.index_cast %4 : i32 to index
    %c0_1 = arith.constant 0 : index
    %6 = vector.load %arg2[%c0, %5, %c0_1] : memref<1x16x32xf32, #tpu.memory_space<vmem>>, vector<1x16x32xf32>
    %7 = vector.shape_cast %6 : vector<1x16x32xf32> to vector<16x32xf32>
    %c0_2 = arith.constant 0 : index
    %c0_3 = arith.constant 0 : index
    %8 = vector.load %arg3[%c0_2, %c0_3] : memref<32x32xf32, #tpu.memory_space<vmem>>, vector<32x32xf32>
    %cst = arith.constant dense<0.000000e+00> : vector<16x32xf32>
    %9 = tpu.matmul %7, %8, %cst {dimension_numbers = #tpu.dot_dimension_numbers<[1], [0], [0], [1], [0, 0, 1, 1], [], []>} : vector<16x32xf32>, vector<32x32xf32>, vector<16x32xf32> -> vector<16x32xf32>
    %c0_4 = arith.constant 0 : index
    %c0_5 = arith.constant 0 : index
    %10 = vector.load %arg4[%c0_4, %c0_5] : memref<1x32xf32, #tpu.memory_space<vmem>>, vector<1x32xf32>
    %11 = vector.broadcast %10 : vector<1x32xf32> to vector<16x32xf32>
    %12 = arith.addf %9, %11 : vector<16x32xf32>
    %c0_6 = arith.constant 0 : index
    %c0_7 = arith.constant 0 : index
    %13 = vector.load %arg13[%c0_6, %c0_7] : memref<16x32xf32, #tpu.memory_space<vmem>>, vector<16x32xf32>
    tpu.vector_store %arg13[%c0_6, %c0_7], %12 {strides = array<i32>} : memref<16x32xf32, #tpu.memory_space<vmem>>, vector<16x32xf32>,
    %cst_8 = arith.constant 0.000000e+00 : f32
    %14 = vector.broadcast %cst_8 : f32 to vector<16x32xf32>
    %c0_9 = arith.constant 0 : index
    %c0_10 = arith.constant 0 : index
    %15 = vector.load %arg16[%c0_9, %c0_10] : memref<16x32xf32, #tpu.memory_space<vmem>>, vector<16x32xf32>
    tpu.vector_store %arg16[%c0_9, %c0_10], %14 {strides = array<i32>} : memref<16x32xf32, #tpu.memory_space<vmem>>, vector<16x32xf32>,
    %c0_11 = arith.constant 0 : index
    %c0_12 = arith.constant 0 : index
    %16 = vector.load %arg13[%c0_11, %c0_12] : memref<16x32xf32, #tpu.memory_space<vmem>>, vector<16x8xf32>
    %c0_13 = arith.constant 0 : index
    %c0_14 = arith.constant 0 : index
    %17 = vector.load %arg14[%c0_13, %c0_14] : memref<16x32xf32, #tpu.memory_space<vmem>>, vector<16x8xf32>
    %c0_15 = arith.constant 0 : index
    %c0_16 = arith.constant 0 : index
    %18 = vector.load %arg15[%c0_15, %c0_16] : memref<16x32xf32, #tpu.memory_space<vmem>>, vector<16x8xf32>
    %cst_17 = arith.constant dense<0.000000e+00> : vector<16x16xf32>
    %19 = tpu.matmul %16, %17, %cst_17 {dimension_numbers = #tpu.dot_dimension_numbers<[1], [1], [0], [0], [0, 0, 1, 0], [], []>} : vector<16x8xf32>, vector<16x8xf32>, vector<16x16xf32> -> vector<16x16xf32>
    %cst_18 = arith.constant dense<0xFF800000> : vector<16xf32>
    %20 = vector.multi_reduction <maximumf>, %19, %cst_18 [1] : vector<16x16xf32> to vector<16xf32>
    %21 = vector.shape_cast %20 : vector<16xf32> to vector<16x1xf32>
    %22 = vector.broadcast %21 : vector<16x1xf32> to vector<16x16xf32>
    %23 = arith.subf %19, %22 : vector<16x16xf32>
    %24 = math.exp %23 : vector<16x16xf32>
    %cst_19 = arith.constant dense<0.000000e+00> : vector<16xf32>
    %25 = vector.multi_reduction <add>, %24, %cst_19 [1] : vector<16x16xf32> to vector<16xf32>
    %26 = vector.shape_cast %25 : vector<16xf32> to vector<16x1xf32>
    %27 = tpu.reciprocal %26 {approx = true} : vector<16x1xf32> -> vector<16x1xf32>
    %28 = arith.mulf %26, %27 : vector<16x1xf32>
    %cst_20 = arith.constant 2.000000e+00 : f32
    %29 = vector.broadcast %cst_20 : f32 to vector<16x1xf32>
    %30 = arith.subf %29, %28 : vector<16x1xf32>
    %31 = arith.mulf %27, %30 : vector<16x1xf32>
    %32 = vector.broadcast %31 : vector<16x1xf32> to vector<16x16xf32>
    %33 = arith.mulf %24, %32 : vector<16x16xf32>
    %c0_21 = arith.constant 0 : index
    %c0_22 = arith.constant 0 : index
    %c0_23 = arith.constant 0 : index
    %c0_24 = arith.constant 0 : index
    %34 = vector.load %arg12[%c0_21, %c0_22, %c0_23, %c0_24] : memref<1x4x16x16xf32, #tpu.memory_space<vmem>>, vector<1x1x16x16xf32>
    %35 = vector.shape_cast %34 : vector<1x1x16x16xf32> to vector<16x16xf32>
    %36 = vector.shape_cast %33 : vector<16x16xf32> to vector<1x1x16x16xf32>
    tpu.vector_store %arg12[%c0_21, %c0_22, %c0_23, %c0_24], %36 {strides = array<i32>} : memref<1x4x16x16xf32, #tpu.memory_space<vmem>>, vector<1x1x16x16xf32>,
    %cst_25 = arith.constant dense<0.000000e+00> : vector<16x8xf32>
    %37 = tpu.matmul %33, %18, %cst_25 {dimension_numbers = #tpu.dot_dimension_numbers<[1], [0], [0], [1], [0, 0, 1, 1], [], []>} : vector<16x16xf32>, vector<16x8xf32>, vector<16x8xf32> -> vector<16x8xf32>
    %c0_26 = arith.constant 0 : index
    %c0_27 = arith.constant 0 : index
    %38 = vector.load %arg16[%c0_26, %c0_27] : memref<16x32xf32, #tpu.memory_space<vmem>>, vector<16x32xf32>
    %c0_28 = arith.constant 0 : index
    %c0_29 = arith.constant 0 : index
    %c0_30 = arith.constant 0 : index
    %39 = vector.load %arg9[%c0_28, %c0_29, %c0_30] : memref<4x8x32xf32, #tpu.memory_space<vmem>>, vector<1x8x32xf32>
    %40 = vector.shape_cast %39 : vector<1x8x32xf32> to vector<8x32xf32>
    %cst_31 = arith.constant dense<0.000000e+00> : vector<16x32xf32>
    %41 = tpu.matmul %37, %40, %cst_31 {dimension_numbers = #tpu.dot_dimension_numbers<[1], [0], [0], [1], [0, 0, 1, 1], [], []>} : vector<16x8xf32>, vector<8x32xf32>, vector<16x32xf32> -> vector<16x32xf32>
    %42 = arith.addf %38, %41 : vector<16x32xf32>
    %c0_32 = arith.constant 0 : index
    %c0_33 = arith.constant 0 : index
    %43 = vector.load %arg16[%c0_32, %c0_33] : memref<16x32xf32, #tpu.memory_space<vmem>>, vector<16x32xf32>
    tpu.vector_store %arg16[%c0_32, %c0_33], %42 {strides = array<i32>} : memref<16x32xf32, #tpu.memory_space<vmem>>, vector<16x32xf32>,
    %c0_34 = arith.constant 0 : index
    %c8 = arith.constant 8 : index
    %44 = vector.load %arg13[%c0_34, %c8] : memref<16x32xf32, #tpu.memory_space<vmem>>, vector<16x8xf32>
    %c0_35 = arith.constant 0 : index
    %c8_36 = arith.constant 8 : index
    %45 = vector.load %arg14[%c0_35, %c8_36] : memref<16x32xf32, #tpu.memory_space<vmem>>, vector<16x8xf32>
    %c0_37 = arith.constant 0 : index
    %c8_38 = arith.constant 8 : index
    %46 = vector.load %arg15[%c0_37, %c8_38] : memref<16x32xf32, #tpu.memory_space<vmem>>, vector<16x8xf32>
    %cst_39 = arith.constant dense<0.000000e+00> : vector<16x16xf32>
    %47 = tpu.matmul %44, %45, %cst_39 {dimension_numbers = #tpu.dot_dimension_numbers<[1], [1], [0], [0], [0, 0, 1, 0], [], []>} : vector<16x8xf32>, vector<16x8xf32>, vector<16x16xf32> -> vector<16x16xf32>
    %cst_40 = arith.constant dense<0xFF800000> : vector<16xf32>
    %48 = vector.multi_reduction <maximumf>, %47, %cst_40 [1] : vector<16x16xf32> to vector<16xf32>
    %49 = vector.shape_cast %48 : vector<16xf32> to vector<16x1xf32>
    %50 = vector.broadcast %49 : vector<16x1xf32> to vector<16x16xf32>
    %51 = arith.subf %47, %50 : vector<16x16xf32>
    %52 = math.exp %51 : vector<16x16xf32>
    %cst_41 = arith.constant dense<0.000000e+00> : vector<16xf32>
    %53 = vector.multi_reduction <add>, %52, %cst_41 [1] : vector<16x16xf32> to vector<16xf32>
    %54 = vector.shape_cast %53 : vector<16xf32> to vector<16x1xf32>
    %55 = tpu.reciprocal %54 {approx = true} : vector<16x1xf32> -> vector<16x1xf32>
    %56 = arith.mulf %54, %55 : vector<16x1xf32>
    %cst_42 = arith.constant 2.000000e+00 : f32
    %57 = vector.broadcast %cst_42 : f32 to vector<16x1xf32>
    %58 = arith.subf %57, %56 : vector<16x1xf32>
    %59 = arith.mulf %55, %58 : vector<16x1xf32>
    %60 = vector.broadcast %59 : vector<16x1xf32> to vector<16x16xf32>
    %61 = arith.mulf %52, %60 : vector<16x16xf32>
    %c0_43 = arith.constant 0 : index
    %c1 = arith.constant 1 : index
    %c0_44 = arith.constant 0 : index
    %c0_45 = arith.constant 0 : index
    %62 = vector.load %arg12[%c0_43, %c1, %c0_44, %c0_45] : memref<1x4x16x16xf32, #tpu.memory_space<vmem>>, vector<1x1x16x16xf32>
    %63 = vector.shape_cast %62 : vector<1x1x16x16xf32> to vector<16x16xf32>
    %64 = vector.shape_cast %61 : vector<16x16xf32> to vector<1x1x16x16xf32>
    tpu.vector_store %arg12[%c0_43, %c1, %c0_44, %c0_45], %64 {strides = array<i32>} : memref<1x4x16x16xf32, #tpu.memory_space<vmem>>, vector<1x1x16x16xf32>,
    %cst_46 = arith.constant dense<0.000000e+00> : vector<16x8xf32>
    %65 = tpu.matmul %61, %46, %cst_46 {dimension_numbers = #tpu.dot_dimension_numbers<[1], [0], [0], [1], [0, 0, 1, 1], [], []>} : vector<16x16xf32>, vector<16x8xf32>, vector<16x8xf32> -> vector<16x8xf32>
    %c0_47 = arith.constant 0 : index
    %c0_48 = arith.constant 0 : index
    %66 = vector.load %arg16[%c0_47, %c0_48] : memref<16x32xf32, #tpu.memory_space<vmem>>, vector<16x32xf32>
    %c1_49 = arith.constant 1 : index
    %c0_50 = arith.constant 0 : index
    %c0_51 = arith.constant 0 : index
    %67 = vector.load %arg9[%c1_49, %c0_50, %c0_51] : memref<4x8x32xf32, #tpu.memory_space<vmem>>, vector<1x8x32xf32>
    %68 = vector.shape_cast %67 : vector<1x8x32xf32> to vector<8x32xf32>
    %cst_52 = arith.constant dense<0.000000e+00> : vector<16x32xf32>
    %69 = tpu.matmul %65, %68, %cst_52 {dimension_numbers = #tpu.dot_dimension_numbers<[1], [0], [0], [1], [0, 0, 1, 1], [], []>} : vector<16x8xf32>, vector<8x32xf32>, vector<16x32xf32> -> vector<16x32xf32>
    %70 = arith.addf %66, %69 : vector<16x32xf32>
    %c0_53 = arith.constant 0 : index
    %c0_54 = arith.constant 0 : index
    %71 = vector.load %arg16[%c0_53, %c0_54] : memref<16x32xf32, #tpu.memory_space<vmem>>, vector<16x32xf32>
    tpu.vector_store %arg16[%c0_53, %c0_54], %70 {strides = array<i32>} : memref<16x32xf32, #tpu.memory_space<vmem>>, vector<16x32xf32>,
    %c0_55 = arith.constant 0 : index
    %c16 = arith.constant 16 : index
    %72 = vector.load %arg13[%c0_55, %c16] : memref<16x32xf32, #tpu.memory_space<vmem>>, vector<16x8xf32>
    %c0_56 = arith.constant 0 : index
    %c16_57 = arith.constant 16 : index
    %73 = vector.load %arg14[%c0_56, %c16_57] : memref<16x32xf32, #tpu.memory_space<vmem>>, vector<16x8xf32>
    %c0_58 = arith.constant 0 : index
    %c16_59 = arith.constant 16 : index
    %74 = vector.load %arg15[%c0_58, %c16_59] : memref<16x32xf32, #tpu.memory_space<vmem>>, vector<16x8xf32>
    %cst_60 = arith.constant dense<0.000000e+00> : vector<16x16xf32>
    %75 = tpu.matmul %72, %73, %cst_60 {dimension_numbers = #tpu.dot_dimension_numbers<[1], [1], [0], [0], [0, 0, 1, 0], [], []>} : vector<16x8xf32>, vector<16x8xf32>, vector<16x16xf32> -> vector<16x16xf32>
    %cst_61 = arith.constant dense<0xFF800000> : vector<16xf32>
    %76 = vector.multi_reduction <maximumf>, %75, %cst_61 [1] : vector<16x16xf32> to vector<16xf32>
    %77 = vector.shape_cast %76 : vector<16xf32> to vector<16x1xf32>
    %78 = vector.broadcast %77 : vector<16x1xf32> to vector<16x16xf32>
    %79 = arith.subf %75, %78 : vector<16x16xf32>
    %80 = math.exp %79 : vector<16x16xf32>
    %cst_62 = arith.constant dense<0.000000e+00> : vector<16xf32>
    %81 = vector.multi_reduction <add>, %80, %cst_62 [1] : vector<16x16xf32> to vector<16xf32>
    %82 = vector.shape_cast %81 : vector<16xf32> to vector<16x1xf32>
    %83 = tpu.reciprocal %82 {approx = true} : vector<16x1xf32> -> vector<16x1xf32>
    %84 = arith.mulf %82, %83 : vector<16x1xf32>
    %cst_63 = arith.constant 2.000000e+00 : f32
    %85 = vector.broadcast %cst_63 : f32 to vector<16x1xf32>
    %86 = arith.subf %85, %84 : vector<16x1xf32>
    %87 = arith.mulf %83, %86 : vector<16x1xf32>
    %88 = vector.broadcast %87 : vector<16x1xf32> to vector<16x16xf32>
    %89 = arith.mulf %80, %88 : vector<16x16xf32>
    %c0_64 = arith.constant 0 : index
    %c2 = arith.constant 2 : index
    %c0_65 = arith.constant 0 : index
    %c0_66 = arith.constant 0 : index
    %90 = vector.load %arg12[%c0_64, %c2, %c0_65, %c0_66] : memref<1x4x16x16xf32, #tpu.memory_space<vmem>>, vector<1x1x16x16xf32>
    %91 = vector.shape_cast %90 : vector<1x1x16x16xf32> to vector<16x16xf32>
    %92 = vector.shape_cast %89 : vector<16x16xf32> to vector<1x1x16x16xf32>
    tpu.vector_store %arg12[%c0_64, %c2, %c0_65, %c0_66], %92 {strides = array<i32>} : memref<1x4x16x16xf32, #tpu.memory_space<vmem>>, vector<1x1x16x16xf32>,
    %cst_67 = arith.constant dense<0.000000e+00> : vector<16x8xf32>
    %93 = tpu.matmul %89, %74, %cst_67 {dimension_numbers = #tpu.dot_dimension_numbers<[1], [0], [0], [1], [0, 0, 1, 1], [], []>} : vector<16x16xf32>, vector<16x8xf32>, vector<16x8xf32> -> vector<16x8xf32>
    %c0_68 = arith.constant 0 : index
    %c0_69 = arith.constant 0 : index
    %94 = vector.load %arg16[%c0_68, %c0_69] : memref<16x32xf32, #tpu.memory_space<vmem>>, vector<16x32xf32>
    %c2_70 = arith.constant 2 : index
    %c0_71 = arith.constant 0 : index
    %c0_72 = arith.constant 0 : index
    %95 = vector.load %arg9[%c2_70, %c0_71, %c0_72] : memref<4x8x32xf32, #tpu.memory_space<vmem>>, vector<1x8x32xf32>
    %96 = vector.shape_cast %95 : vector<1x8x32xf32> to vector<8x32xf32>
    %cst_73 = arith.constant dense<0.000000e+00> : vector<16x32xf32>
    %97 = tpu.matmul %93, %96, %cst_73 {dimension_numbers = #tpu.dot_dimension_numbers<[1], [0], [0], [1], [0, 0, 1, 1], [], []>} : vector<16x8xf32>, vector<8x32xf32>, vector<16x32xf32> -> vector<16x32xf32>
    %98 = arith.addf %94, %97 : vector<16x32xf32>
    %c0_74 = arith.constant 0 : index
    %c0_75 = arith.constant 0 : index
    %99 = vector.load %arg16[%c0_74, %c0_75] : memref<16x32xf32, #tpu.memory_space<vmem>>, vector<16x32xf32>
    tpu.vector_store %arg16[%c0_74, %c0_75], %98 {strides = array<i32>} : memref<16x32xf32, #tpu.memory_space<vmem>>, vector<16x32xf32>,
    %c0_76 = arith.constant 0 : index
    %c24 = arith.constant 24 : index
    %100 = vector.load %arg13[%c0_76, %c24] : memref<16x32xf32, #tpu.memory_space<vmem>>, vector<16x8xf32>
    %c0_77 = arith.constant 0 : index
    %c24_78 = arith.constant 24 : index
    %101 = vector.load %arg14[%c0_77, %c24_78] : memref<16x32xf32, #tpu.memory_space<vmem>>, vector<16x8xf32>
    %c0_79 = arith.constant 0 : index
    %c24_80 = arith.constant 24 : index
    %102 = vector.load %arg15[%c0_79, %c24_80] : memref<16x32xf32, #tpu.memory_space<vmem>>, vector<16x8xf32>
    %cst_81 = arith.constant dense<0.000000e+00> : vector<16x16xf32>
    %103 = tpu.matmul %100, %101, %cst_81 {dimension_numbers = #tpu.dot_dimension_numbers<[1], [1], [0], [0], [0, 0, 1, 0], [], []>} : vector<16x8xf32>, vector<16x8xf32>, vector<16x16xf32> -> vector<16x16xf32>
    %cst_82 = arith.constant dense<0xFF800000> : vector<16xf32>
    %104 = vector.multi_reduction <maximumf>, %103, %cst_82 [1] : vector<16x16xf32> to vector<16xf32>
    %105 = vector.shape_cast %104 : vector<16xf32> to vector<16x1xf32>
    %106 = vector.broadcast %105 : vector<16x1xf32> to vector<16x16xf32>
    %107 = arith.subf %103, %106 : vector<16x16xf32>
    %108 = math.exp %107 : vector<16x16xf32>
    %cst_83 = arith.constant dense<0.000000e+00> : vector<16xf32>
    %109 = vector.multi_reduction <add>, %108, %cst_83 [1] : vector<16x16xf32> to vector<16xf32>
    %110 = vector.shape_cast %109 : vector<16xf32> to vector<16x1xf32>
    %111 = tpu.reciprocal %110 {approx = true} : vector<16x1xf32> -> vector<16x1xf32>
    %112 = arith.mulf %110, %111 : vector<16x1xf32>
    %cst_84 = arith.constant 2.000000e+00 : f32
    %113 = vector.broadcast %cst_84 : f32 to vector<16x1xf32>
    %114 = arith.subf %113, %112 : vector<16x1xf32>
    %115 = arith.mulf %111, %114 : vector<16x1xf32>
    %116 = vector.broadcast %115 : vector<16x1xf32> to vector<16x16xf32>
    %117 = arith.mulf %108, %116 : vector<16x16xf32>
    %c0_85 = arith.constant 0 : index
    %c3 = arith.constant 3 : index
    %c0_86 = arith.constant 0 : index
    %c0_87 = arith.constant 0 : index
    %118 = vector.load %arg12[%c0_85, %c3, %c0_86, %c0_87] : memref<1x4x16x16xf32, #tpu.memory_space<vmem>>, vector<1x1x16x16xf32>
    %119 = vector.shape_cast %118 : vector<1x1x16x16xf32> to vector<16x16xf32>
    %120 = vector.shape_cast %117 : vector<16x16xf32> to vector<1x1x16x16xf32>
    tpu.vector_store %arg12[%c0_85, %c3, %c0_86, %c0_87], %120 {strides = array<i32>} : memref<1x4x16x16xf32, #tpu.memory_space<vmem>>, vector<1x1x16x16xf32>,
    %cst_88 = arith.constant dense<0.000000e+00> : vector<16x8xf32>
    %121 = tpu.matmul %117, %102, %cst_88 {dimension_numbers = #tpu.dot_dimension_numbers<[1], [0], [0], [1], [0, 0, 1, 1], [], []>} : vector<16x16xf32>, vector<16x8xf32>, vector<16x8xf32> -> vector<16x8xf32>
    %c0_89 = arith.constant 0 : index
    %c0_90 = arith.constant 0 : index
    %122 = vector.load %arg16[%c0_89, %c0_90] : memref<16x32xf32, #tpu.memory_space<vmem>>, vector<16x32xf32>
    %c3_91 = arith.constant 3 : index
    %c0_92 = arith.constant 0 : index
    %c0_93 = arith.constant 0 : index
    %123 = vector.load %arg9[%c3_91, %c0_92, %c0_93] : memref<4x8x32xf32, #tpu.memory_space<vmem>>, vector<1x8x32xf32>
    %124 = vector.shape_cast %123 : vector<1x8x32xf32> to vector<8x32xf32>
    %cst_94 = arith.constant dense<0.000000e+00> : vector<16x32xf32>
    %125 = tpu.matmul %121, %124, %cst_94 {dimension_numbers = #tpu.dot_dimension_numbers<[1], [0], [0], [1], [0, 0, 1, 1], [], []>} : vector<16x8xf32>, vector<8x32xf32>, vector<16x32xf32> -> vector<16x32xf32>
    %126 = arith.addf %122, %125 : vector<16x32xf32>
    %c0_95 = arith.constant 0 : index
    %c0_96 = arith.constant 0 : index
    %127 = vector.load %arg16[%c0_95, %c0_96] : memref<16x32xf32, #tpu.memory_space<vmem>>, vector<16x32xf32>
    tpu.vector_store %arg16[%c0_95, %c0_96], %126 {strides = array<i32>} : memref<16x32xf32, #tpu.memory_space<vmem>>, vector<16x32xf32>,
    %c0_97 = arith.constant 0 : index
    %c0_98 = arith.constant 0 : index
    %128 = vector.load %arg16[%c0_97, %c0_98] : memref<16x32xf32, #tpu.memory_space<vmem>>, vector<16x32xf32>
    %c0_99 = arith.constant 0 : index
    %c0_100 = arith.constant 0 : index
    %129 = vector.load %arg10[%c0_99, %c0_100] : memref<1x32xf32, #tpu.memory_space<vmem>>, vector<1x32xf32>
    %130 = vector.broadcast %129 : vector<1x32xf32> to vector<16x32xf32>
    %131 = arith.addf %128, %130 : vector<16x32xf32>
    %c0_101 = arith.constant 0 : index
    %c0_102 = arith.constant 0 : index
    %c0_103 = arith.constant 0 : index
    %132 = vector.load %arg11[%c0_101, %c0_102, %c0_103] : memref<1x16x32xf32, #tpu.memory_space<vmem>>, vector<1x16x32xf32>
    %133 = vector.shape_cast %132 : vector<1x16x32xf32> to vector<16x32xf32>
    %134 = vector.shape_cast %131 : vector<16x32xf32> to vector<1x16x32xf32>
    tpu.vector_store %arg11[%c0_101, %c0_102, %c0_103], %134 {strides = array<i32>} : memref<1x16x32xf32, #tpu.memory_space<vmem>>, vector<1x16x32xf32>,
    return
  }
  func.func @transform_0(%arg0: i32, %arg1: i32) -> (i32, i32, i32) {
    %c0_i32 = arith.constant 0 : i32
    %c0_i32_0 = arith.constant 0 : i32
    %c0_i32_1 = arith.constant 0 : i32
    return %arg0, %c0_i32, %c0_i32_0 : i32, i32, i32
  }
  func.func @transform_1(%arg0: i32, %arg1: i32) -> (i32, i32) {
    %c0_i32 = arith.constant 0 : i32
    %c0_i32_0 = arith.constant 0 : i32
    %c0_i32_1 = arith.constant 0 : i32
    return %c0_i32, %c0_i32_0 : i32, i32
  }
  func.func @transform_2(%arg0: i32, %arg1: i32) -> (i32, i32) {
    %c0_i32 = arith.constant 0 : i32
    %c0_i32_0 = arith.constant 0 : i32
    %c0_i32_1 = arith.constant 0 : i32
    return %c0_i32, %c0_i32_0 : i32, i32
  }
  func.func @transform_3(%arg0: i32, %arg1: i32) -> (i32, i32) {
    %c0_i32 = arith.constant 0 : i32
    %c0_i32_0 = arith.constant 0 : i32
    %c0_i32_1 = arith.constant 0 : i32
    return %c0_i32, %c0_i32_0 : i32, i32
  }
  func.func @transform_4(%arg0: i32, %arg1: i32) -> (i32, i32) {
    %c0_i32 = arith.constant 0 : i32
    %c0_i32_0 = arith.constant 0 : i32
    %c0_i32_1 = arith.constant 0 : i32
    return %c0_i32, %c0_i32_0 : i32, i32
  }
  func.func @transform_5(%arg0: i32, %arg1: i32) -> (i32, i32) {
    %c0_i32 = arith.constant 0 : i32
    %c0_i32_0 = arith.constant 0 : i32
    %c0_i32_1 = arith.constant 0 : i32
    return %c0_i32, %c0_i32_0 : i32, i32
  }
  func.func @transform_6(%arg0: i32, %arg1: i32) -> (i32, i32) {
    %c0_i32 = arith.constant 0 : i32
    %c0_i32_0 = arith.constant 0 : i32
    %c0_i32_1 = arith.constant 0 : i32
    return %c0_i32, %c0_i32_0 : i32, i32
  }
  func.func @transform_7(%arg0: i32, %arg1: i32) -> (i32, i32, i32) {
    %c0_i32 = arith.constant 0 : i32
    %c0_i32_0 = arith.constant 0 : i32
    %c0_i32_1 = arith.constant 0 : i32
    %c0_i32_2 = arith.constant 0 : i32
    return %c0_i32, %c0_i32_0, %c0_i32_1 : i32, i32, i32
  }
  func.func @transform_8(%arg0: i32, %arg1: i32) -> (i32, i32) {
    %c0_i32 = arith.constant 0 : i32
    %c0_i32_0 = arith.constant 0 : i32
    %c0_i32_1 = arith.constant 0 : i32
    return %c0_i32, %c0_i32_0 : i32, i32
  }
  func.func @transform_9(%arg0: i32, %arg1: i32) -> (i32, i32, i32) {
    %c0_i32 = arith.constant 0 : i32
    %c0_i32_0 = arith.constant 0 : i32
    return %arg0, %arg1, %c0_i32 : i32, i32, i32
  }
  func.func @transform_10(%arg0: i32, %arg1: i32) -> (i32, i32, i32, i32) {
    %c0_i32 = arith.constant 0 : i32
    %c0_i32_0 = arith.constant 0 : i32
    %c0_i32_1 = arith.constant 0 : i32
    return %arg0, %c0_i32, %arg1, %c0_i32_0 : i32, i32, i32, i32
  }
}

</mosaic_0001>

<bundles_post_ra>
// kernel: tpu_custom_call.1
= control target key start
LH: loop header
LB: loop body
LE: loop exit
PB: predicated region body
PF: predicated region fallthrough
CT: control target
= control target key end

     0   :  { %s3528_s0 = inlined_call_operand.hbm [shape: f32[2,16,32], index: 0, kind: input, shape index: {}]   ;;  %s3529_s1 = inlined_call_operand.hbm [shape: f32[32,32], index: 1, kind: input, shape index: {}]   ;;  %s3530_s2 = inlined_call_operand.vmem [shape: f32[1,32], index: 2, kind: input, shape index: {}]   ;;  %s3531_s3 = inlined_call_operand.hbm [shape: f32[32,32], index: 3, kind: input, shape index: {}]   ;;  %s3532_s4 = inlined_call_operand.vmem [shape: f32[1,32], index: 4, kind: input, shape index: {}]   ;;  %s3533_s5 = inlined_call_operand.hbm [shape: f32[32,32], index: 5, kind: input, shape index: {}]   ;;  %s3534_s6 = inlined_call_operand.vmem [shape: f32[1,32], index: 6, kind: input, shape index: {}]   ;;  %s3535_s7 = inlined_call_operand.hbm [shape: f32[4,8,32], index: 7, kind: input, shape index: {}]   ;;  %s3536_s8 = inlined_call_operand.vmem [shape: f32[1,32], index: 8, kind: input, shape index: {}]   ;;  %s3537_s9 = inlined_call_operand.hbm [shape: f32[2,16,32], index: 9, kind: output, shape index: {0}]   ;;  %s3538_s10 = inlined_call_operand.hbm [shape: f32[2,4,16,16], index: 10, kind: output, shape index: {1}]  }
   0x1   :  { %3548 = sst [smem:[#allocation26_spill]] %s3534_s6 }
   0x2   :  { %3549 = sst [smem:[#allocation27_spill]] %s3536_s8 }
   0x3   :  { %3550 = sst [smem:[#allocation28_spill]] %s3537_s9 }
   0x4   :  { %3551 = sst [smem:[#allocation29_spill]] %s3538_s10 }
   0x5   :  { %16 = vsyncpa [#allocation7], 0 }
   0x6   :  { %18 = vsyncpa [#allocation7 + $0x1], 0 }
   0x7   :  { %19 = vsyncpa [#allocation10], 0 }
   0x8   :  { %20 = vsyncpa [#allocation13], 0 }
   0x9   :  { %21 = vsyncpa [#allocation8], 0 }
   0xa   :  { %23 = vsyncpa [#allocation8 + $0x1], 0 }
   0xb   :  { %24 = vsyncpa [#allocation17], 0 }
   0xc   :  { %26 = vsyncpa [#allocation17 + $0x1], 0  ;;  %s3017_s13 = smov 0   ;;  %s3019_s14 = smov 0  }
   0xd   :  { %s3021_s15 = smov 0   ;;  %s3023_s16 = smov 0  }
   0xe   :  { %s3025_s17 = smov 0   ;;  %s3027_s18 = smov 0  }
   0xf LB: > { %3552 = sst [smem:[#allocation23_spill]] %s2925_s13  ;;  %s2190_s19 = sadd.s32 4294967295, %s2945_s18   ;;  %s2945_s18 = sphi %s3027_s18, %s32_s18   ;;  %s2941_s17 = sphi %s3025_s17, %s3583_s17   ;;  %s2937_s16 = sphi %s3023_s16, %s3582_s16   ;;  %s2933_s15 = sphi %s3021_s15, %s3581_s15   ;;  %s2929_s14 = sphi %s3019_s14, %s3580_s14   ;;  %s2925_s13 = sphi %s3017_s13, %s3579_s13  }
  0x10   : > { %3553 = sst [smem:[#allocation24_spill]] %s2937_s16  ;;  %s2191_s20 = sadd.s32 4294967294, %s2945_s18  }
  0x11   : > { %p64_p0 = scmp.ne.s32.totalorder %s2929_s14, %s2925_s13  ;;  %p3051_p1 = scmp.eq.s32.totalorder %s2190_s19, 0 }
  0x12   : > { %p3055_p2 = scmp.eq.s32.totalorder %s2190_s19, 1  ;;  %p264_p3 = scmp.eq.s32.totalorder %s2191_s20, 1 }
  0x13   : > { %s3554_s21 = scalar_select %p3051_p1, 1, 0 }
  0x14   : > { %s3555_s22 = scalar_select %p3055_p2, 1, 0 }
  0x15   : > { %p3061_p4 = por %p3051_p1, %p64_p0  ;;  %p2192_p5 = scmp.ge.s32.totalorder %s2945_s18, 1 }
  0x16   : > { %p3066_p6 = por %p264_p3, %p64_p0  ;;  %p299_p7 = scmp.lt.s32.totalorder %s2945_s18, 3 }
  0x17   : > { %s3556_s23 = scalar_select %p3061_p4, 1, 0 }
  0x18   : > { %s3557_s24 = scalar_select %p3066_p6, 1, 0 }
  0x19   : > { %p3071_p8 = pnand %p2192_p5, %p299_p7  ;;  %s2947_s26 = smov [#allocation9]  }
  0x1a   : > { %3558 = sst [smem:[#allocation25_spill]] %s3557_s24  ;;  %s311_s27 = sshll.u32 %s2947_s26, 4  ;;  %s3075_s27 = int_to_ptr.vmem [resolvable:$true] %s311_s27 }
  0x1b   : > { %s3559_s25 = scalar_select %p3071_p8, 1, 0 }
  0x1c   : > { %p2525_p9 = pneg %p3071_p8  ;;  %s2948_s29 = smov [#allocation12]  }
  0x1d   : > { %s343_s30 = sshll.u32 %s2948_s29, 4  ;;  %s2949_s11 = smov [#allocation11]   ;;  %s3086_s30 = int_to_ptr.vmem [resolvable:$true] %s343_s30 }
  0x1e   : > { %p3082_p11 = pnand %p2525_p9, %p3051_p1  ;;  %s3088_s12 = sshll.u32 %s2949_s11, 4  ;;  %s328_s12 = int_to_ptr.vmem [resolvable:$true] %s3088_s12 }
  0x1f   : > { %s2681_s26 = scalar_lea.hbm %s3529_s1, 512 }
  0x20   : > { %p2682_p12 = scmp.ne.s32.totalorder %s3529_s1, %s2681_s26  ;;  %p3098_p13 = pneg %p3082_p11 }
  0x21   : > { %p2688_p5 = scmp.lt.u32.totalorder %s2681_s26, %s3529_s1 }
  0x22   : > { %p2684_p0 = pnand %p3098_p13, %p2682_p12 }
  0x24   : > { %p2685_p3 = pneg %p2684_p0 }
  0x26   : > { %p2690_p7 = pnand %p2688_p5, %p2685_p3 }
  0x28   : > { %2693 = shalt.err (!%p2690_p7)
}
  0x29   : > { %s2694_s13 = scalar_lea.vmem %s3075_s27, 512  ;;  %p2702_p1 = scmp.lt.s32.totalorder %s3075_s27, %s3075_s27 }
  0x2a   : > { %p2695_p9 = scmp.ne.s32.totalorder %s3075_s27, %s2694_s13  ;;  %p2703_p4 = scmp.lt.s32.totalorder %s2694_s13, %s2694_s13 }
  0x2c   : > { %p2697_p10 = pnand %p2695_p9, %p3098_p13  ;;  %p2704_p12 = por %p2703_p4, %p2702_p1 }
  0x2e   : > { %p2698_p6 = pneg %p2697_p10 }
  0x30   : > { %p2705_p0 = pnand %p2704_p12, %p2698_p6 }
  0x32   : > { %2708 = shalt.err (!%p2705_p0)
}
  0x33   : > { %s2950_s24 = smov 128   ;;  %s2951_s19 = smov 8  }
  0x34   : > { %2528 = dma.hbm_to_vmem [thread:$0]  (!%p3082_p11), %s3529_s1, 512, %s3075_s27, [#allocation10], %s2950_s24, %s2950_s24, %s2951_s19  }
  0x35   : > { %s2709_s13 = scalar_lea.hbm %s3533_s5, 512 }
  0x36   : > { %p2710_p1 = scmp.ne.s32.totalorder %s3533_s5, %s2709_s13  ;;  %p2716_p10 = scmp.lt.u32.totalorder %s2709_s13, %s3533_s5 }
  0x38   : > { %p2712_p4 = pnand %p2710_p1, %p3098_p13 }
  0x3a   : > { %p2713_p6 = pneg %p2712_p4 }
  0x3c   : > { %p2718_p3 = pnand %p2716_p10, %p2713_p6 }
  0x3e   : > { %2721 = shalt.err (!%p2718_p3)
}
  0x3f   : > { %s2722_s27 = scalar_lea.vmem %s3086_s30, 512  ;;  %p2730_p12 = scmp.lt.s32.totalorder %s3086_s30, %s3086_s30 }
  0x40   : > { %p2723_p5 = scmp.ne.s32.totalorder %s3086_s30, %s2722_s27  ;;  %p2731_p0 = scmp.lt.s32.totalorder %s2722_s27, %s2722_s27 }
  0x42   : > { %p2725_p7 = pnand %p2723_p5, %p3098_p13  ;;  %p2732_p1 = por %p2731_p0, %p2730_p12 }
  0x44   : > { %p2726_p9 = pneg %p2725_p7 }
  0x46   : > { %p2733_p4 = pnand %p2732_p1, %p2726_p9 }
  0x48   : > { %2736 = shalt.err (!%p2733_p4)
}
  0x49   : > { %2534 = dma.hbm_to_vmem [thread:$0]  (!%p3082_p11), %s3533_s5, 512, %s3086_s30, [#allocation13], %s2950_s24, %s2950_s24, %s2951_s19  }
  0x4a   : > { %s2737_s20 = scalar_lea.hbm %s3531_s3, 512 }
  0x4b   : > { %p2738_p6 = scmp.ne.s32.totalorder %s3531_s3, %s2737_s20  ;;  %p2744_p5 = scmp.lt.u32.totalorder %s2737_s20, %s3531_s3 }
  0x4d   : > { %p2740_p10 = pnand %p2738_p6, %p3098_p13 }
  0x4f   : > { %p2741_p3 = pneg %p2740_p10 }
  0x51   : > { %p2746_p7 = pnand %p2744_p5, %p2741_p3 }
  0x53   : > { %2749 = shalt.err (!%p2746_p7)
}
  0x54   : > { %s2750_s27 = scalar_lea.vmem %s328_s12, 512  ;;  %p2758_p1 = scmp.lt.s32.totalorder %s328_s12, %s328_s12 }
  0x55   : > { %p2751_p9 = scmp.ne.s32.totalorder %s328_s12, %s2750_s27  ;;  %p2759_p4 = scmp.lt.s32.totalorder %s2750_s27, %s2750_s27 }
  0x57   : > { %p2753_p12 = pnand %p2751_p9, %p3098_p13  ;;  %p2760_p8 = por %p2759_p4, %p2758_p1 }
  0x59   : > { %p2754_p0 = pneg %p2753_p12 }
  0x5b   : > { %p2761_p2 = pnand %p2760_p8, %p2754_p0 }
  0x5d   : > { %2764 = shalt.err (!%p2761_p2)
}
  0x5e   : > { %2531 = dma.hbm_to_vmem [thread:$0]  (!%p3082_p11), %s3531_s3, 512, %s328_s12, [#allocation10], %s2950_s24, %s2950_s24, %s2951_s19  }
  0x5f   : > { %s2952_s8 = smov [#allocation14]   ;;  %s2765_s26 = scalar_lea.hbm %s3535_s7, 512 }
  0x60   : > { %s359_s10 = sshll.u32 %s2952_s8, 4  ;;  %p2766_p2 = scmp.ne.s32.totalorder %s3535_s7, %s2765_s26  ;;  %s360_s10 = int_to_ptr.vmem [resolvable:$true] %s359_s10 }
  0x61   : > { %p2772_p10 = scmp.lt.u32.totalorder %s2765_s26, %s3535_s7 }
  0x62   : > { %p2768_p8 = pnand %p2766_p2, %p3098_p13 }
  0x64   : > { %p2769_p6 = pneg %p2768_p8 }
  0x66   : > { %p2774_p3 = pnand %p2772_p10, %p2769_p6 }
  0x68   : > { %2777 = shalt.err (!%p2774_p3)
}
  0x69   : > { %s2778_s12 = scalar_lea.vmem %s360_s10, 512  ;;  %p2786_p12 = scmp.lt.s32.totalorder %s360_s10, %s360_s10 }
  0x6a   : > { %p2779_p5 = scmp.ne.s32.totalorder %s360_s10, %s2778_s12  ;;  %p2787_p0 = scmp.lt.s32.totalorder %s2778_s12, %s2778_s12 }
  0x6c   : > { %p2781_p7 = pnand %p2779_p5, %p3098_p13  ;;  %p2788_p1 = por %p2787_p0, %p2786_p12 }
  0x6e   : > { %p2782_p9 = pneg %p2781_p7 }
  0x70   : > { %p2789_p4 = pnand %p2788_p1, %p2782_p9 }
  0x72   : > { %2792 = shalt.err (!%p2789_p4)
}
  0x73   : > { %2537 = dma.hbm_to_vmem [thread:$0]  (!%p3082_p11), %s3535_s7, 512, %s360_s10, [#allocation13], %s2950_s24, %s2950_s24, %s2951_s19  }
  0x74   : > { %s44_s9 = sadd.s32 1, %s2941_s17  ;;  %s51_s28 = sadd.s32 1, %s2933_s15 }
  0x75   : > { %p46_p13 = scmp.ge.s32.totalorder %s44_s9, 2  ;;  %p58_p2 = scmp.ne.s32.totalorder %s2933_s15, %s2929_s14 }
  0x76   : > { %p59_p8 = scmp.eq.s32.totalorder %s2945_s18, 0  ;;  %p2553_p6 = scmp.lt.s32.totalorder %s2945_s18, 2 }
  0x77   : > { %s3585_s9 = smov (%p46_p13, %s44_s9), 0  ;;  %p3562_p3 = scmp.ne.s32.totalorder %s3555_s22, 0 }
  0x78   : > { %p60_p10 = por %p59_p8, %p58_p2  ;;  %s48_s16 = ssub.s32 %s2941_s17, %s3585_s9 }
  0x79   : > { %p3201_p5 = por %p3562_p3, %p58_p2  ;;  %s376_s20 = sand.u32 1, %s2933_s15  }
  0x7a   : > { %p49_p7 = scmp.eq.s32.totalorder %s48_s16, 0  ;;  %s2198_s10 = sshll.u32 %s376_s20, 4 }
  0x7b   : > { %s2265_s26 = sshll.u32 %s2941_s17, 8  ;;  %s380_s22 = scalar_lea.vmem [#allocation6], %s2198_s10 }
  0x7c   : > { %s3210_s29 = scalar_select %p49_p7, %s2933_s15, %s51_s28  }
  0x7d   : > { %s3215_s27 = scalar_lea.hbm %s3528_s0, %s2265_s26  ;;  %s387_s12 = sshll.u32 %s380_s22, 4  ;;  %s3223_s12 = int_to_ptr.vmem [resolvable:$true] %s387_s12 }
  0x7e   : > { %p3219_p11 = pnand %p2553_p6, %p60_p10  ;;  %s3225_s6 = scalar_lea.sflag [#allocation7], %s376_s20 }
  0x7f   : > { %s2793_s28 = scalar_lea.hbm %s3215_s27, 256  ;;  %s2798_s26 = scalar_lea.hbm %s3528_s0, 512 }
  0x80   : > { %p2794_p9 = scmp.ne.s32.totalorder %s3215_s27, %s2793_s28  ;;  %p2795_p12 = pneg %p3219_p11 }
  0x81   : > { %p2799_p4 = scmp.lt.u32.totalorder %s3215_s27, %s3528_s0  ;;  %p2800_p13 = scmp.lt.u32.totalorder %s2798_s26, %s2793_s28 }
  0x82   : > { %p2796_p0 = pnand %p2795_p12, %p2794_p9  ;;  %p2802_p8 = scmp.lt.u32.totalorder %s2793_s28, %s3215_s27 }
  0x83   : > { %p2801_p2 = por %p2800_p13, %p2799_p4 }
  0x84   : > { %p2797_p1 = pneg %p2796_p0 }
  0x85   : > { %p2803_p6 = por %p2802_p8, %p2801_p2 }
  0x87   : > { %p2804_p10 = pnand %p2803_p6, %p2797_p1 }
  0x89   : > { %2807 = shalt.err (!%p2804_p10)
}
  0x8a   : > { %s2808_s20 = scalar_lea.vmem %s3223_s12, 256  ;;  %s2953_s22 = smov [#allocation6]  }
  0x8b   : > { %p2809_p3 = scmp.ne.s32.totalorder %s3223_s12, %s2808_s20  ;;  %s2813_s16 = sshll.u32 %s2953_s22, 4  ;;  %s2814_s16 = int_to_ptr.vmem [resolvable:$false] %s2813_s16 }
  0x8c   : > { %s2815_s10 = scalar_lea.vmem %s2814_s16, 512  ;;  %p2816_p0 = scmp.lt.s32.totalorder %s3223_s12, %s2814_s16 }
  0x8d   : > { %p2811_p7 = pnand %p2809_p3, %p2795_p12  ;;  %p2817_p4 = scmp.lt.s32.totalorder %s2815_s10, %s2808_s20 }
  0x8f   : > { %p2812_p9 = pneg %p2811_p7  ;;  %p2818_p13 = por %p2817_p4, %p2816_p0 }
  0x91   : > { %p2819_p2 = pnand %p2818_p13, %p2812_p9 }
  0x93   : > { %2822 = shalt.err (!%p2819_p2)
}
  0x94   : > { %2541 = dma.hbm_to_vmem [thread:$0]  (!%p3219_p11), %s3215_s27, 256, %s3223_s12, %s3225_s6, %s2950_s24, %s2950_s24, %s2951_s19  }
  0x95   : > { %p3565_p12 = scmp.ne.s32.totalorder %s3559_s25, 0 }
  0x96   : > { %s3259_s28 = sand.u32 (!%p3565_p12), 1, %s2929_s14   ;;  %p3566_p1 = scmp.ne.s32.totalorder (!%p3565_p12), %s3556_s23, 0 }
  0x97   : > { %399 = sbr.rel (%p3565_p12) target bundleno = 2380 (0x94c), region = 56  ;;  %s2202_s26 = sshll.u32 (!%p3565_p12), %s3259_s28, 4 }
  0x98   : > { %s402_s11 = scalar_lea.sflag (!%p3565_p12), [#allocation7], %s3259_s28  ;;  %s405_s30 = scalar_lea.vmem (!%p3565_p12), [#allocation6], %s2202_s26 }
  0x9e   : > { %2904 = dma.done.wait (%p3566_p1), %s402_s11, 256  }
  0x9f   : > { %2906 = vsyncadd (%p3566_p1), %s402_s11, 4294967040  ;;  %p3567_p11 = scmp.ne.s32.totalorder %s3554_s21, 0 }
  0xa1   : > { %2908 = dma.done.wait (%p3567_p11), [#allocation10], 1024  }
  0xa2   : > { %2910 = vsyncadd (%p3567_p11), [#allocation10], 4294966272 }
  0xa3   : > { %2912 = dma.done.wait (%p3567_p11), [#allocation13], 1024  }
  0xa4   : > { %2914 = vsyncadd (%p3567_p11), [#allocation13], 4294966272  ;;  %vm482_vm0 = vcmask 261120   ;;  %v471_v0 = vld [vmem:[#allocation11] sm:$0xff]  ;;  %v472_v1 = vld [vmem:[#allocation11 + $0x8] sm:$0xff]  ;;  %vm761_vm1 = vcmask 64512  }
  0xa5   : > { %v473_v2 = vld [vmem:[#allocation11 + $0x10] sm:$0xff]  ;;  %v2439_v3 = vpack.c.bf16 %v472_v1, %v471_v0  ;;  %v474_v4 = vld [vmem:[#allocation11 + $0x18] sm:$0xff]  ;;  %v658_v7 = vld [vmem:[#allocation9] sm:$0xff]  ;;  %s3570_s12 = sld [smem:[#allocation26_spill]]  ;;  %vm849_vm3 = vcmask 130048   ;;  %s2954_s6 = smov 120  }
  0xa6   : > { %v469_v5 = vld [vmem:[%s405_s30] sm:$0xff]  ;;  %v2443_v6 = vpack.c.bf16 %v474_v4, %v473_v2  ;;  %v659_v8 = vld [vmem:[#allocation9 + $0x8] sm:$0xff]  ;;  %v661_v11 = vld [vmem:[#allocation9 + $0x18] sm:$0xff]  ;;  %s2955_s13 = smov 112   ;;  %s2208_s20 = sshll.u32 %s3259_s28, 6 }
  0xa7   : > { %2338 = vmatprep.mubr.msk.f32.mxu0 %vm482_vm0, %v469_v5  ;;  %2349 = vmatprep.mubr.msk.f32.mxu1 %vm482_vm0, %v469_v5  ;;  %v2455_v9 = vpack.c.bf16 %v659_v8, %v658_v7  ;;  %v660_v10 = vld [vmem:[#allocation9 + $0x10] sm:$0xff]  ;;  %v470_v12 = vld [vmem:[%s405_s30 + $0x8] sm:$0xff]  ;;  %v564_v14 = vld [vmem:[#allocation12] sm:$0xff]  ;;  %s3339_s22 = scalar_lea.vmem [#allocation16], %s2208_s20  ;;  %s2956_s16 = smov 104  }
  0xa8   : > { %2440 = vmatprep.subr.bf16.mxu0 %v2439_v3  ;;  %v2459_v13 = vpack.c.bf16 %v661_v11, %v660_v10  ;;  %v565_v15 = vld [vmem:[#allocation12 + $0x8] sm:$0xff]  ;;  %v566_v17 = vld [vmem:[#allocation12 + $0x10] sm:$0xff]  ;;  %v567_v18 = vld [vmem:[#allocation12 + $0x18] sm:$0xff]  ;;  %s3571_s10 = sld [smem:[#allocation24_spill]]  ;;  %s2031_s30 = sshll.u32 %s3339_s22, 4  ;;  %s3432_s30 = int_to_ptr.vmem [resolvable:$true] %s2031_s30 }
  0xa9   : > { %2442 = vmatpush3.bf16.msra.mxu0 %v2439_v3  ;;  %v2447_v16 = vpack.c.bf16 %v565_v15, %v564_v14  ;;  %v2451_v19 = vpack.c.bf16 %v567_v18, %v566_v17  ;;  %v2209_v20 = vld [vmem:[%s3532_s4] ss:$0 sm:$0xff]  ;;  %vm3294_vm2 = vmpackc.low %vm761_vm1, %vm761_vm1  ;;  %s3572_s25 = sld [smem:[#allocation29_spill]]  ;;  %s1998_s19 = scalar_lea.sflag [#allocation17], %s3259_s28 }
  0xaa   : > { %2444 = vmatprep.subr.bf16.mxu0 %v2443_v6  ;;  %v2215_v25 = vld [vmem:[%s3530_s2] ss:$0 sm:$0xff]  ;;  %s2823_s27 = scalar_lea.vmem %s3432_s30, 1024 }
  0xab   : > { %2448 = vmatprep.subr.bf16.mxu1 %v2447_v16  ;;  %v2212_v37 = vld [vmem:[%s3570_s12] ss:$0 sm:$0xff]  ;;  %p2824_p8 = scmp.ne.s32.totalorder %s3432_s30, %s2823_s27  ;;  %s2958_s12 = smov [#allocation16]  }
  0xac   : > { %2450 = vmatpush3.bf16.msra.mxu1 %v2447_v16 }
  0xad   : > { %2446 = vmatpush3.bf16.msra.mxu0 %v2443_v6  ;;  %2452 = vmatprep.subr.bf16.mxu1 %v2451_v19  ;;  %p2825_p6 = pnand %p2824_p8, %p3201_p5 }
  0xae   : > { %2456 = vmatprep.subr.bf16.mxu0 %v2455_v9  ;;  %s2267_s11 = sshll.u32 %s3571_s10, 10 }
  0xaf   : > { %s3430_s24 = scalar_lea.hbm %s3572_s25, %s2267_s11  ;;  %p2826_p10 = pneg %p2825_p6 }
  0xb0   : > { %2339 = vmatmul.mubr.msk.f32.vlgmr.msra.gmra.mrb[0].mxu0 %vm482_vm0, %v470_v12  ;;  %2454 = vmatpush3.bf16.msra.mxu1 %v2451_v19 }
  0xb1   : > { %2458 = vmatpush3.bf16.msra.mxu0 %v2455_v9  ;;  %2360 = vmatprep.mubr.msk.f32.mxu0 %vm482_vm0, %v469_v5 }
  0xb2   : > { %2460 = vmatprep.subr.bf16.mxu0 %v2459_v13 }
  0xb3   : > { %2350 = vmatmul.mubr.msk.f32.vlgmr.msra.gmra.mrb[0].mxu1 %vm482_vm0, %v470_v12 }
  0xb5   : > { %2462 = vmatpush3.bf16.msra.mxu0 %v2459_v13 }
  0xb8   : > { %2361 = vmatmul.mubr.msk.f32.vlgmr.msra.gmra.mrb[2].mxu0 %vm482_vm0, %v470_v12 }
 0x183   : > { %v2340_v21 = vpop.f32.mrb[0].mxu0 }
 0x184   : > { %v561_v22 = vadd.f32 %v2340_v21, %v2209_v20  ;;  %v555_v23 = vpop.f32.mrb[1].mxu0 }
 0x185   : > { %v556_v24 = vadd.f32 %v2209_v20, %v555_v23  ;;  %v963_v20 = vld [vmem:[#allocation14] sm:$0xff] }
 0x186   : > { %651 = vst.msk [vmem:[#allocation3 + $0x8] sm:$0xff] %vm482_vm0, %v561_v22  ;;  %v2351_v38 = vpop.f32.mrb[0].mxu1 }
 0x187   : > { %650 = vst.msk [vmem:[#allocation3] sm:$0xff] %vm482_vm0, %v556_v24  ;;  %v647_v39 = vadd.f32 %v2351_v38, %v2212_v37  ;;  %v641_v40 = vpop.f32.mrb[1].mxu1 }
 0x188   : > { %v642_v41 = vadd.f32 %v2212_v37, %v641_v40 }
 0x189   : > { %653 = vst.msk [vmem:[#allocation4 + $0x8] sm:$0xff] %vm482_vm0, %v647_v39 }
 0x18a   : > { %652 = vst.msk [vmem:[#allocation4] sm:$0xff] %vm482_vm0, %v642_v41 }
 0x18b   : > { %v2362_v26 = vpop.f32.mrb[2].mxu0 }
 0x18c   : > { %v748_v27 = vadd.f32 %v2362_v26, %v2215_v25  ;;  %v742_v28 = vpop.f32.mrb[3].mxu0 }
 0x18d   : > { %v743_v29 = vadd.f32 %v2215_v25, %v742_v28  ;;  %v758_v30 = vld [vmem:[#allocation3 + $0x8] sm:$0xff] }
 0x18e   : > { %752 = vst.msk [vmem:[#allocation2 + $0x8] sm:$0xff] %vm482_vm0, %v748_v27  ;;  %v757_v31 = vld [vmem:[#allocation3] sm:$0xff] }
 0x18f   : > { %751 = vst.msk [vmem:[#allocation2] sm:$0xff] %vm482_vm0, %v743_v29  ;;  %v2463_v33 = vpack.c.bf16 %v758_v30, %v757_v31  ;;  %v3299_v34 = vpack.i.bf16 %v758_v30, %v757_v31  ;;  %v2957_v30 = vmov 0.0  }
 0x190   : > { %v760_v43 = vld [vmem:[#allocation4 + $0x8] sm:$0xff]  ;;  %754 = vst.msk [vmem:[#allocation5 + $0x8] sm:$0xff] %vm482_vm0, %v2957_v30  ;;  %753 = vst.msk [vmem:[#allocation5] sm:$0xff] %vm482_vm0, %v2957_v30 }
 0x191   : > { %2465 = vmatprep.subr.msk.bf16.mxu1 %vm3294_vm2, %v2463_v33  ;;  %v759_v42 = vld [vmem:[#allocation4] sm:$0xff] }
 0x192   : > { %2468 = vmatpush3.bf16.xpose.msk.msra.mxu1 %vm3294_vm2, %v2463_v33  ;;  %v2469_v44 = vpack.c.bf16 %v760_v43, %v759_v42  ;;  %v3318_v45 = vpack.i.bf16 %v760_v43, %v759_v42 }
 0x193   : > { %2377 = vmatprep.subr.mxu1 %v963_v20 }
 0x194   : > { %2470 = vmatprep.subr.bf16.mxu0 %v2469_v44 }
 0x195   : > { %v3309_v36 = vld [vmem:[#allocation2 + $0x8] sm:$0xff]  ;;  %2472 = vmatpush3.bf16.msra.mxu0 %v2469_v44 }
 0x196   : > { %v3305_v35 = vld [vmem:[#allocation2] sm:$0xff] }
 0x197   : > { %2367 = vmatprep.mubr.msk.f32.mxu1 %vm761_vm1, %v3305_v35 }
 0x199   : > { %2368 = vmatmul.mubr.msk.f32.vlgmr.msra.gmra.mrb[2].mxu1 %vm761_vm1, %v3309_v36 }
 0x19a   : > { %2378 = vmatpush3.msra.mxu1 %v963_v20 }
 0x26c   : > { %v2369_v46 = vpop.f32.mrb[2].mxu1 }
 0x26d   : > { %v840_v47 = vpop.f32.mrb[3].mxu1  ;;  %v853_v49 = vsel %vm849_vm3, %v2369_v46, -inf }
 0x26e   : > { %v850_v48 = vsel %vm849_vm3, %v840_v47, -inf }
 0x26f   : > { %851 = vmax.xlane.f32.xlu0 %v850_v48 }
 0x273   : > { %854 = vmax.xlane.f32.xlu0 %v853_v49 }
 0x289   : > { %2620 = vrot.lane.b32.xlu0 %v3299_v34, %s2954_s6 }
 0x28d   : > { %1367 = vrot.lane.b32.xlu0 %v3305_v35, %s2955_s13 }
 0x2fc   : > { %v852_v50 = vpop.xlane.xlu0 %851 }
 0x2fd   : > { %v856_v51 = vsub.f32 %v840_v47, %v852_v50  ;;  %v962_v50 = vld [vmem:[#allocation5 + $0x8] sm:$0xff] }
 0x2ff   : > { %v858_v52 = vmul.f32 1.442695, %v856_v51 }
 0x300   : > { %v855_v53 = vpop.xlane.xlu0 %854 }
 0x301   : > { %2649 = vpow2.f32 %v858_v52  ;;  %v857_v54 = vsub.f32 %v2369_v46, %v855_v53  ;;  %v961_v52 = vld [vmem:[#allocation5] sm:$0xff] }
 0x303   : > { %v860_v55 = vmul.f32 1.442695, %v857_v54 }
 0x304   : > { %v2621_v56 = vpop.permute.xlu0 %2620 }
 0x305   : > { %2651 = vpow2.f32 %v860_v55  ;;  %v2623_v57 = vunpack.i.h.bf16 %v2621_v56  ;;  %v2622_v58 = vunpack.i.l.bf16 %v2621_v56 }
 0x307   : > { %v2473_v59 = vpack.c.bf16 %v2623_v57, %v2622_v58 }
 0x308   : > { %v1368_v18 = vpop.permute.xlu0 %1367 }
 0x309   : > { %2475 = vmatprep.subr.msk.bf16.mxu0 %vm3294_vm2, %v2473_v59 }
 0x30b   : > { %v2650_v60 = vpop.eup %2649 }
 0x30c   : > { %v862_v61 = vsel %vm849_vm3, %v2650_v60, 0.0 }
 0x30d   : > { %863 = vadd.xlane.f32.xlu1 %v862_v61 }
 0x30f   : > { %v2652_v62 = vpop.eup %2651 }
 0x310   : > { %v865_v63 = vsel %vm849_vm3, %v2652_v62, 0.0 }
 0x311   : > { %866 = vadd.xlane.f32.xlu1 %v865_v63 }
 0x322   : > { %1057 = vrot.lane.b32.xlu1 %v3305_v35, %s2954_s6 }
 0x326   : > { %1059 = vrot.lane.b32.xlu1 %v3309_v36, %s2954_s6 }
 0x32a   : > { %2625 = vrot.lane.b32.xlu1 %v3299_v34, %s2955_s13 }
 0x32e   : > { %1369 = vrot.lane.b32.xlu1 %v3309_v36, %s2955_s13 }
 0x39a   : > { %v864_v0 = vpop.xlane.xlu1 %863 }
 0x39b   : > { %2653 = vrcp.f32 %v864_v0 }
 0x39e   : > { %v867_v1 = vpop.xlane.xlu1 %866 }
 0x39f   : > { %2655 = vrcp.f32 %v867_v1 }
 0x3a2   : > { %v1058_v2 = vpop.permute.xlu1 %1057 }
 0x3a5   : > { %v2654_v3 = vpop.eup %2653 }
 0x3a6   : > { %v870_v4 = vmul.f32 %v2654_v3, %v864_v0  ;;  %v1060_v5 = vpop.permute.xlu1 %1059 }
 0x3a8   : > { %v872_v6 = vsub.f32 2.0, %v870_v4 }
 0x3a9   : > { %v2656_v7 = vpop.eup %2655 }
 0x3aa   : > { %v874_v8 = vmul.f32 %v2654_v3, %v872_v6  ;;  %v871_v9 = vmul.f32 %v2656_v7, %v867_v1  ;;  %v2626_v10 = vpop.permute.xlu1 %2625 }
 0x3ab   : > { %v2628_v14 = vunpack.i.h.bf16 %v2626_v10  ;;  %v2627_v15 = vunpack.i.l.bf16 %v2626_v10 }
 0x3ac   : > { %v876_v11 = vmul.f32 %v2650_v60, %v874_v8  ;;  %v873_v12 = vsub.f32 2.0, %v871_v9 }
 0x3ad   : > { %v2483_v17 = vpack.c.bf16 %v2628_v14, %v2627_v15 }
 0x3ae   : > { %878 = vst.msk [vmem:[%s3339_s22] sm:$0xff] %vm849_vm3, %v876_v11  ;;  %v875_v13 = vmul.f32 %v2656_v7, %v873_v12  ;;  %2374 = vmatprep.mubr.msk.f32.mxu0 %vm849_vm3, %v876_v11  ;;  %v1370_v19 = vpop.permute.xlu1 %1369 }
 0x3b0   : > { %v877_v16 = vmul.f32 %v2652_v62, %v875_v13 }
 0x3b2   : > { %879 = vst.msk [vmem:[%s3339_s22 + $0x8] sm:$0xff] %vm849_vm3, %v877_v16  ;;  %2375 = vmatmul.mubr.msk.f32.vlgmr.msra.gmra.mrb[4].mxu0 %vm849_vm3, %v877_v16 }
 0x3b3   : > { %2478 = vmatpush3.bf16.xpose.msk.msra.mxu0 %vm3294_vm2, %v2473_v59  ;;  %2386 = vmatprep.mubr.msk.f32.mxu0 %vm761_vm1, %v1058_v2 }
 0x3b4   : > { %2485 = vmatprep.subr.msk.bf16.mxu0 %vm3294_vm2, %v2483_v17 }
 0x3ba   : > { %2387 = vmatmul.mubr.msk.f32.vlgmr.msra.gmra.mrb[6].mxu0 %vm761_vm1, %v1060_v5 }
 0x3bb   : > { %2488 = vmatpush3.bf16.xpose.msk.msra.mxu0 %vm3294_vm2, %v2483_v17  ;;  %2405 = vmatprep.mubr.msk.f32.mxu0 %vm761_vm1, %v1368_v18 }
 0x3c2   : > { %2406 = vmatmul.mubr.msk.f32.vlgmr.msra.gmra.mrb[8].mxu0 %vm761_vm1, %v1370_v19 }
 0x485   : > { %v2376_v21 = vpop.f32.mrb[4].mxu0 }
 0x486   : > { %v952_v22 = vpop.f32.mrb[5].mxu0 }
 0x487   : > { %2379 = vmatprep.mubr.msk.f32.mxu1 %vm761_vm1, %v952_v22 }
 0x488   : > { %2380 = vmatmul.mubr.msk.f32.vlgmr.msra.gmra.mrb[4].mxu1 %vm761_vm1, %v2376_v21 }
 0x48d   : > { %v2388_v23 = vpop.f32.mrb[6].mxu0 }
 0x48e   : > { %v1141_v24 = vpop.f32.mrb[7].mxu0  ;;  %v1153_v25 = vsel %vm849_vm3, %v2388_v23, -inf }
 0x48f   : > { %1154 = vmax.xlane.f32.xlu1 %v1153_v25  ;;  %v1150_v26 = vsel %vm849_vm3, %v1141_v24, -inf }
 0x490   : > { %1151 = vmax.xlane.f32.xlu0 %v1150_v26 }
 0x495   : > { %v2407_v27 = vpop.f32.mrb[8].mxu0 }
 0x496   : > { %v3361_v28 = vpop.f32.mrb[9].mxu0  ;;  %v1463_v29 = vsel %vm849_vm3, %v2407_v27, -inf }
 0x497   : > { %v1460_v57 = vsel %vm849_vm3, %v3361_v28, -inf }
 0x4a0   : > { %2635 = vrot.lane.b32.xlu1 %v3299_v34, %s2956_s16 }
 0x4a4   : > { %1677 = vrot.lane.b32.xlu1 %v3305_v35, %s2956_s16 }
 0x4a8   : > { %1679 = vrot.lane.b32.xlu1 %v3309_v36, %s2956_s16 }
 0x4cc   : > { %1464 = vmax.xlane.f32.xlu1 %v1463_v29 }
 0x51c   : > { %v1155_v31 = vpop.xlane.xlu1 %1154 }
 0x51d   : > { %v1157_v33 = vsub.f32 %v2388_v23, %v1155_v31  ;;  %v1152_v37 = vpop.xlane.xlu0 %1151 }
 0x51e   : > { %v1156_v38 = vsub.f32 %v1141_v24, %v1152_v37 }
 0x51f   : > { %v1160_v39 = vmul.f32 1.442695, %v1157_v33 }
 0x520   : > { %v1158_v34 = vmul.f32 1.442695, %v1156_v38  ;;  %v2636_v40 = vpop.permute.xlu1 %2635 }
 0x521   : > { %2657 = vpow2.f32 %v1160_v39  ;;  %v2638_v35 = vunpack.i.h.bf16 %v2636_v40  ;;  %v2637_v41 = vunpack.i.l.bf16 %v2636_v40 }
 0x522   : > { %2659 = vpow2.f32 %v1158_v34 }
 0x523   : > { %v2493_v36 = vpack.c.bf16 %v2638_v35, %v2637_v41 }
 0x524   : > { %v1678_v42 = vpop.permute.xlu1 %1677 }
 0x525   : > { %2495 = vmatprep.subr.msk.bf16.mxu0 %vm3294_vm2, %v2493_v36  ;;  %2424 = vmatprep.mubr.msk.f32.mxu0 %vm761_vm1, %v1678_v42 }
 0x526   : > { %2498 = vmatpush3.bf16.xpose.msk.msra.mxu0 %vm3294_vm2, %v2493_v36 }
 0x528   : > { %v1680_v44 = vpop.permute.xlu1 %1679 }
 0x52b   : > { %v2658_v43 = vpop.eup %2657 }
 0x52c   : > { %v1165_v46 = vsel %vm849_vm3, %v2658_v43, 0.0  ;;  %v2660_v47 = vpop.eup %2659 }
 0x52d   : > { %2425 = vmatmul.mubr.msk.f32.vlgmr.msra.gmra.mrb[10].mxu0 %vm761_vm1, %v1680_v44  ;;  %1166 = vadd.xlane.f32.xlu0 %v1165_v46  ;;  %v1162_v48 = vsel %vm849_vm3, %v2660_v47, 0.0 }
 0x531   : > { %1163 = vadd.xlane.f32.xlu0 %v1162_v48 }
 0x547   : > { %2630 = vrot.lane.b32.xlu0 %v3318_v45, %s2954_s6  ;;  %s2827_s6 = sshll.u32 %s2958_s12, 4  ;;  %s2828_s6 = int_to_ptr.vmem [resolvable:$false] %s2827_s6 }
 0x548   : > { %p2830_p3 = scmp.lt.s32.totalorder %s3432_s30, %s2828_s6 }
 0x559   : > { %v1465_v49 = vpop.xlane.xlu1 %1464 }
 0x55a   : > { %v1467_v51 = vsub.f32 %v2407_v27, %v1465_v49  ;;  %v1273_v27 = vld [vmem:[#allocation14 + $0x8] sm:$0xff] }
 0x55b   : > { %v2381_v32 = vpop.f32.mrb[4].mxu1 }
 0x55c   : > { %v1470_v53 = vmul.f32 1.442695, %v1467_v51  ;;  %v1046_v54 = vadd.f32 %v2381_v32, %v962_v50  ;;  %v1036_v55 = vpop.f32.mrb[5].mxu1 }
 0x55d   : > { %v1045_v56 = vadd.f32 %v1036_v55, %v961_v52  ;;  %v1583_v52 = vld [vmem:[#allocation14 + $0x10] sm:$0xff] }
 0x55e   : > { %2661 = vpow2.f32 %v1470_v53  ;;  %1048 = vst.msk [vmem:[#allocation5 + $0x8] sm:$0xff] %vm482_vm0, %v1046_v54 }
 0x55f   : > { %1047 = vst.msk [vmem:[#allocation5] sm:$0xff] %vm482_vm0, %v1045_v56 }
 0x566   : > { %1461 = vmax.xlane.f32.xlu0 %v1460_v57 }
 0x568   : > { %v2662_v58 = vpop.eup %2661 }
 0x569   : > { %v1475_v59 = vsel %vm849_vm3, %v2662_v58, 0.0 }
 0x56a   : > { %1476 = vadd.xlane.f32.xlu0 %v1475_v59 }
 0x5ba   : > { %v1167_v60 = vpop.xlane.xlu0 %1166 }
 0x5bb   : > { %2663 = vrcp.f32 %v1167_v60 }
 0x5be   : > { %v1164_v61 = vpop.xlane.xlu0 %1163 }
 0x5bf   : > { %2665 = vrcp.f32 %v1164_v61 }
 0x5c2   : > { %v2631_v62 = vpop.permute.xlu0 %2630 }
 0x5c3   : > { %v2633_v63 = vunpack.i.h.bf16 %v2631_v62  ;;  %v2632_v0 = vunpack.i.l.bf16 %v2631_v62 }
 0x5c5   : > { %v2664_v1 = vpop.eup %2663  ;;  %v2479_v2 = vpack.c.bf16 %v2633_v63, %v2632_v0 }
 0x5c6   : > { %v1171_v3 = vmul.f32 %v2664_v1, %v1167_v60 }
 0x5c7   : > { %2480 = vmatprep.subr.bf16.mxu1 %v2479_v2 }
 0x5c8   : > { %v1173_v4 = vsub.f32 2.0, %v1171_v3  ;;  %2482 = vmatpush3.bf16.msra.mxu1 %v2479_v2  ;;  %v1271_v3 = vld [vmem:[#allocation5 + $0x8] sm:$0xff] }
 0x5c9   : > { %v2666_v5 = vpop.eup %2665  ;;  %2396 = vmatprep.subr.mxu1 %v1273_v27 }
 0x5ca   : > { %v1175_v6 = vmul.f32 %v2664_v1, %v1173_v4  ;;  %v1170_v7 = vmul.f32 %v2666_v5, %v1164_v61 }
 0x5cc   : > { %v1177_v8 = vmul.f32 %v2658_v43, %v1175_v6  ;;  %v1172_v9 = vsub.f32 2.0, %v1170_v7  ;;  %v1270_v6 = vld [vmem:[#allocation5] sm:$0xff] }
 0x5ce   : > { %2231 = vst.msk [vmem:[%s3339_s22 + $0x18] sm:$0xff] %vm849_vm3, %v1177_v8  ;;  %v1174_v10 = vmul.f32 %v2666_v5, %v1172_v9 }
 0x5d0   : > { %v1176_v11 = vmul.f32 %v2660_v47, %v1174_v10 }
 0x5d2   : > { %2230 = vst.msk [vmem:[%s3339_s22 + $0x10] sm:$0xff] %vm849_vm3, %v1176_v11  ;;  %2393 = vmatprep.mubr.msk.f32.mxu1 %vm849_vm3, %v1176_v11  ;;  %v1893_v11 = vld [vmem:[#allocation14 + $0x18] sm:$0xff] }
 0x5d3   : > { %2394 = vmatmul.mubr.msk.f32.vlgmr.msra.gmra.mrb[6].mxu1 %vm849_vm3, %v1177_v8 }
 0x5d4   : > { %2397 = vmatpush3.msra.mxu1 %v1273_v27 }
 0x5f3   : > { %v1462_v12 = vpop.xlane.xlu0 %1461 }
 0x5f4   : > { %v1466_v13 = vsub.f32 %v3361_v28, %v1462_v12 }
 0x5f6   : > { %v1468_v14 = vmul.f32 1.442695, %v1466_v13 }
 0x5f7   : > { %v1477_v15 = vpop.xlane.xlu0 %1476 }
 0x5f8   : > { %2667 = vpow2.f32 %v1468_v14 }
 0x5f9   : > { %2669 = vrcp.f32 %v1477_v15 }
 0x600   : > { %v2426_v16 = vpop.f32.mrb[10].mxu0 }
 0x601   : > { %v1761_v17 = vpop.f32.mrb[11].mxu0  ;;  %v1773_v24 = vsel %vm849_vm3, %v2426_v16, -inf }
 0x602   : > { %v2668_v18 = vpop.eup %2667  ;;  %v1770_v19 = vsel %vm849_vm3, %v1761_v17, -inf }
 0x603   : > { %v2670_v20 = vpop.eup %2669  ;;  %1771 = vmax.xlane.f32.xlu1 %v1770_v19  ;;  %v1472_v21 = vsel %vm849_vm3, %v2668_v18, 0.0 }
 0x604   : > { %v1481_v22 = vmul.f32 %v2670_v20, %v1477_v15  ;;  %1473 = vadd.xlane.f32.xlu0 %v1472_v21 }
 0x606   : > { %v1483_v23 = vsub.f32 2.0, %v1481_v22 }
 0x607   : > { %1774 = vmax.xlane.f32.xlu1 %v1773_v24 }
 0x608   : > { %v1485_v25 = vmul.f32 %v2670_v20, %v1483_v23 }
 0x60a   : > { %v1487_v26 = vmul.f32 %v2662_v58, %v1485_v25 }
 0x60c   : > { %2241 = vst.msk [vmem:[%s3339_s22 + $0x28] sm:$0xff] %vm849_vm3, %v1487_v26 }
 0x61a   : > { %2640 = vrot.lane.b32.xlu0 %v3318_v45, %s2955_s13  ;;  %s2829_s13 = scalar_lea.vmem %s2828_s6, 2048 }
 0x61b   : > { %p2831_p7 = scmp.lt.s32.totalorder %s2829_s13, %s2823_s27 }
 0x61d   : > { %p2832_p9 = por %p2831_p7, %p2830_p3 }
 0x61f   : > { %p2833_p0 = pnand %p2832_p9, %p2826_p10 }
 0x690   : > { %v1772_v28 = vpop.xlane.xlu1 %1771 }
 0x691   : > { %v1474_v29 = vpop.xlane.xlu0 %1473  ;;  %v1776_v30 = vsub.f32 %v1761_v17, %v1772_v28 }
 0x692   : > { %2671 = vrcp.f32 %v1474_v29 }
 0x693   : > { %v1778_v34 = vmul.f32 1.442695, %v1776_v30 }
 0x694   : > { %v1775_v31 = vpop.xlane.xlu1 %1774 }
 0x695   : > { %v1777_v33 = vsub.f32 %v2426_v16, %v1775_v31  ;;  %v2641_v37 = vpop.permute.xlu0 %2640 }
 0x696   : > { %v2643_v38 = vunpack.i.h.bf16 %v2641_v37  ;;  %v2642_v39 = vunpack.i.l.bf16 %v2641_v37 }
 0x697   : > { %v1780_v40 = vmul.f32 1.442695, %v1777_v33 }
 0x698   : > { %v2489_v35 = vpack.c.bf16 %v2643_v38, %v2642_v39 }
 0x699   : > { %2673 = vpow2.f32 %v1780_v40 }
 0x69a   : > { %2490 = vmatprep.subr.bf16.mxu1 %v2489_v35  ;;  %2675 = vpow2.f32 %v1778_v34 }
 0x69c   : > { %v2672_v41 = vpop.eup %2671 }
 0x69d   : > { %v1480_v36 = vmul.f32 %v2672_v41, %v1474_v29 }
 0x69f   : > { %v1482_v42 = vsub.f32 2.0, %v1480_v36 }
 0x6a1   : > { %v1484_v43 = vmul.f32 %v2672_v41, %v1482_v42 }
 0x6a3   : > { %v2674_v44 = vpop.eup %2673  ;;  %v1486_v46 = vmul.f32 %v2668_v18, %v1484_v43 }
 0x6a4   : > { %v1785_v47 = vsel %vm849_vm3, %v2674_v44, 0.0  ;;  %v2676_v48 = vpop.eup %2675 }
 0x6a5   : > { %2240 = vst.msk [vmem:[%s3339_s22 + $0x20] sm:$0xff] %vm849_vm3, %v1486_v46  ;;  %1786 = vadd.xlane.f32.xlu1 %v1785_v47  ;;  %v1782_v51 = vsel %vm849_vm3, %v2676_v48, 0.0 }
 0x6a6   : > { %v2395_v49 = vpop.f32.mrb[6].mxu1 }
 0x6a7   : > { %v1261_v50 = vpop.f32.mrb[7].mxu1 }
 0x6a8   : > { %2398 = vmatprep.mubr.msk.f32.mxu1 %vm761_vm1, %v1261_v50 }
 0x6a9   : > { %1783 = vadd.xlane.f32.xlu1 %v1782_v51  ;;  %2399 = vmatmul.mubr.msk.f32.vlgmr.msra.gmra.mrb[8].mxu1 %vm761_vm1, %v2395_v49 }
 0x6aa   : > { %2492 = vmatpush3.bf16.msra.mxu1 %v2489_v35  ;;  %2412 = vmatprep.mubr.msk.f32.mxu1 %vm849_vm3, %v1486_v46 }
 0x6ab   : > { %2415 = vmatprep.subr.mxu1 %v1583_v52 }
 0x6ad   : > { %2413 = vmatmul.mubr.msk.f32.vlgmr.msra.gmra.mrb[10].mxu1 %vm849_vm3, %v1487_v26 }
 0x6ae   : > { %2416 = vmatpush3.msra.mxu1 %v1583_v52 }
 0x6ba   : > { %2645 = vrot.lane.b32.xlu1 %v3318_v45, %s2956_s16 }
 0x732   : > { %v1787_v32 = vpop.xlane.xlu1 %1786 }
 0x733   : > { %2677 = vrcp.f32 %v1787_v32 }
 0x736   : > { %v1784_v53 = vpop.xlane.xlu1 %1783 }
 0x737   : > { %2679 = vrcp.f32 %v1784_v53 }
 0x73a   : > { %v2646_v54 = vpop.permute.xlu1 %2645 }
 0x73b   : > { %v2648_v55 = vunpack.i.h.bf16 %v2646_v54  ;;  %v2647_v56 = vunpack.i.l.bf16 %v2646_v54 }
 0x73d   : > { %v2678_v57 = vpop.eup %2677  ;;  %v2499_v58 = vpack.c.bf16 %v2648_v55, %v2647_v56 }
 0x73e   : > { %v1791_v59 = vmul.f32 %v2678_v57, %v1787_v32 }
 0x73f   : > { %2500 = vmatprep.subr.bf16.mxu1 %v2499_v58 }
 0x740   : > { %v1793_v60 = vsub.f32 2.0, %v1791_v59 }
 0x741   : > { %v2680_v61 = vpop.eup %2679 }
 0x742   : > { %v1795_v62 = vmul.f32 %v2678_v57, %v1793_v60  ;;  %v1790_v45 = vmul.f32 %v2680_v61, %v1784_v53 }
 0x744   : > { %v1797_v63 = vmul.f32 %v2674_v44, %v1795_v62  ;;  %v1792_v0 = vsub.f32 2.0, %v1790_v45 }
 0x746   : > { %2251 = vst.msk [vmem:[%s3339_s22 + $0x38] sm:$0xff] %vm849_vm3, %v1797_v63  ;;  %v1794_v1 = vmul.f32 %v2680_v61, %v1792_v0 }
 0x748   : > { %v1796_v2 = vmul.f32 %v2676_v48, %v1794_v1 }
 0x74a   : > { %2250 = vst.msk [vmem:[%s3339_s22 + $0x30] sm:$0xff] %vm849_vm3, %v1796_v2 }
 0x77c   : > { %v2400_v4 = vpop.f32.mrb[8].mxu1 }
 0x77d   : > { %v1356_v5 = vadd.f32 %v2400_v4, %v1271_v3  ;;  %v1346_v7 = vpop.f32.mrb[9].mxu1 }
 0x77e   : > { %v1355_v8 = vadd.f32 %v1346_v7, %v1270_v6 }
 0x77f   : > { %1358 = vst.msk [vmem:[#allocation5 + $0x8] sm:$0xff] %vm482_vm0, %v1356_v5 }
 0x780   : > { %1357 = vst.msk [vmem:[#allocation5] sm:$0xff] %vm482_vm0, %v1355_v8  ;;  %v2414_v9 = vpop.f32.mrb[10].mxu1 }
 0x781   : > { %v1571_v10 = vpop.f32.mrb[11].mxu1 }
 0x782   : > { %2417 = vmatprep.mubr.msk.f32.mxu1 %vm761_vm1, %v1571_v10 }
 0x783   : > { %2418 = vmatmul.mubr.msk.f32.vlgmr.msra.gmra.mrb[12].mxu1 %vm761_vm1, %v2414_v9 }
 0x784   : > { %2502 = vmatpush3.bf16.msra.mxu1 %v2499_v58  ;;  %2431 = vmatprep.mubr.msk.f32.mxu1 %vm849_vm3, %v1796_v2 }
 0x785   : > { %2434 = vmatprep.subr.mxu1 %v1893_v11 }
 0x786   : > { %v1581_v12 = vld [vmem:[#allocation5 + $0x8] sm:$0xff] }
 0x787   : > { %2432 = vmatmul.mubr.msk.f32.vlgmr.msra.gmra.mrb[14].mxu1 %vm849_vm3, %v1797_v63  ;;  %v1580_v15 = vld [vmem:[#allocation5] sm:$0xff] }
 0x788   : > { %2435 = vmatpush3.msra.mxu1 %v1893_v11 }
 0x856   : > { %v2419_v13 = vpop.f32.mrb[12].mxu1 }
 0x857   : > { %v1666_v14 = vadd.f32 %v2419_v13, %v1581_v12  ;;  %v1656_v16 = vpop.f32.mrb[13].mxu1 }
 0x858   : > { %v1665_v17 = vadd.f32 %v1656_v16, %v1580_v15 }
 0x859   : > { %1668 = vst.msk [vmem:[#allocation5 + $0x8] sm:$0xff] %vm482_vm0, %v1666_v14 }
 0x85a   : > { %1667 = vst.msk [vmem:[#allocation5] sm:$0xff] %vm482_vm0, %v1665_v17  ;;  %v2433_v18 = vpop.f32.mrb[14].mxu1 }
 0x85b   : > { %v1881_v19 = vpop.f32.mrb[15].mxu1 }
 0x85c   : > { %2436 = vmatprep.mubr.msk.f32.mxu1 %vm761_vm1, %v1881_v19 }
 0x85d   : > { %2437 = vmatmul.mubr.msk.f32.vlgmr.msra.gmra.mrb[16].mxu1 %vm761_vm1, %v2433_v18 }
 0x85e   : > { %2836 = shalt.err (!%p2833_p0)
}
 0x85f   : > { %s2837_s20 = scalar_lea.hbm %s3430_s24, 1024  ;;  %s2841_s11 = scalar_lea.hbm %s3572_s25, 2048 }
 0x860   : > { %p2838_p4 = scmp.ne.s32.totalorder %s3430_s24, %s2837_s20  ;;  %p2842_p12 = scmp.lt.u32.totalorder %s3430_s24, %s3572_s25 }
 0x861   : > { %p2843_p1 = scmp.lt.u32.totalorder %s2841_s11, %s2837_s20  ;;  %p2845_p8 = scmp.lt.u32.totalorder %s2837_s20, %s3430_s24 }
 0x862   : > { %p2839_p13 = pnand %p2838_p4, %p3201_p5 }
 0x863   : > { %p2844_p11 = por %p2843_p1, %p2842_p12 }
 0x864   : > { %p2840_p2 = pneg %p2839_p13 }
 0x865   : > { %p2846_p6 = por %p2845_p8, %p2844_p11 }
 0x867   : > { %p2847_p10 = pnand %p2846_p6, %p2840_p2 }
 0x869   : > { %2850 = shalt.err (!%p2847_p10)
}
 0x86a   : > { %s2959_s27 = smov 128   ;;  %s2960_s12 = smov 8   ;;  %v1891_v20 = vld [vmem:[#allocation5 + $0x8] sm:$0xff]  ;;  %v1890_v23 = vld [vmem:[#allocation5] sm:$0xff] }
 0x86b   : > { %2522 = dma.vmem_to_hbm [thread:$0]  (%p3201_p5), %s3432_s30, 1024, %s3430_s24, %s1998_s19, %s2959_s27, %s2959_s27, %s2960_s12  }
 0x86c   : > { %s3573_s20 = sld [smem:[#allocation27_spill]]  ;;  %s2266_s22 = sshll.u32 %s3571_s10, 8 }
 0x86d   : > { %s455_s16 = scalar_lea.vmem [#allocation15], %s2202_s26  ;;  %s3574_s11 = sld [smem:[#allocation28_spill]] }
 0x86e   : > { %s2013_s30 = sshll.u32 %s455_s16, 4  ;;  %s1993_s26 = scalar_lea.sflag [#allocation8], %s3259_s28  ;;  %s3474_s30 = int_to_ptr.vmem [resolvable:$true] %s2013_s30 }
 0x86f   : > { %s2851_s10 = scalar_lea.vmem %s3474_s30, 256  ;;  %s2961_s23 = smov [#allocation15]  }
 0x870   : > { %p2852_p3 = scmp.ne.s32.totalorder %s3474_s30, %s2851_s10  ;;  %s2855_s6 = sshll.u32 %s2961_s23, 4  ;;  %s2856_s6 = int_to_ptr.vmem [resolvable:$false] %s2855_s6 }
 0x871   : > { %s2857_s13 = scalar_lea.vmem %s2856_s6, 512  ;;  %p2858_p0 = scmp.lt.s32.totalorder %s3474_s30, %s2856_s6 }
 0x872   : > { %v2256_v26 = vld [vmem:[%s3573_s20] ss:$0 sm:$0xff]  ;;  %p2853_p7 = pnand %p2852_p3, %p3201_p5  ;;  %p2859_p4 = scmp.lt.s32.totalorder %s2857_s13, %s2851_s10 }
 0x873   : > { %s3472_s21 = scalar_lea.hbm %s3574_s11, %s2266_s22 }
 0x874   : > { %p2854_p9 = pneg %p2853_p7  ;;  %p2860_p13 = por %p2859_p4, %p2858_p0 }
 0x876   : > { %p2861_p2 = pnand %p2860_p13, %p2854_p9 }
 0x930   : > { %v2438_v21 = vpop.f32.mrb[16].mxu1 }
 0x931   : > { %v1976_v22 = vadd.f32 %v2438_v21, %v1891_v20  ;;  %v1966_v24 = vpop.f32.mrb[17].mxu1 }
 0x932   : > { %v1975_v25 = vadd.f32 %v1966_v24, %v1890_v23 }
 0x933   : > { %1978 = vst.msk [vmem:[#allocation5 + $0x8] sm:$0xff] %vm482_vm0, %v1976_v22 }
 0x934   : > { %1977 = vst.msk [vmem:[#allocation5] sm:$0xff] %vm482_vm0, %v1975_v25 }
 0x93a   : > { %v1980_v27 = vld [vmem:[#allocation5 + $0x8] sm:$0xff] }
 0x93b   : > { %v1979_v28 = vld [vmem:[#allocation5] sm:$0xff]  ;;  %v1989_v29 = vadd.f32 %v2256_v26, %v1980_v27 }
 0x93c   : > { %v1988_v30 = vadd.f32 %v2256_v26, %v1979_v28 }
 0x93d   : > { %1991 = vst.msk [vmem:[%s455_s16 + $0x8] sm:$0xff] %vm482_vm0, %v1989_v29 }
 0x93e   : > { %1990 = vst.msk [vmem:[%s455_s16] sm:$0xff] %vm482_vm0, %v1988_v30 }
 0x93f   : > { %2864 = shalt.err (!%p2861_p2)
}
 0x940   : > { %s2865_s20 = scalar_lea.hbm %s3472_s21, 256  ;;  %s2869_s24 = scalar_lea.hbm %s3574_s11, 512 }
 0x941   : > { %p2866_p12 = scmp.ne.s32.totalorder %s3472_s21, %s2865_s20  ;;  %p2870_p8 = scmp.lt.u32.totalorder %s3472_s21, %s3574_s11 }
 0x942   : > { %p2871_p6 = scmp.lt.u32.totalorder %s2869_s24, %s2865_s20  ;;  %p2873_p3 = scmp.lt.u32.totalorder %s2865_s20, %s3472_s21 }
 0x943   : > { %p2867_p1 = pnand %p2866_p12, %p3201_p5 }
 0x944   : > { %p2872_p10 = por %p2871_p6, %p2870_p8 }
 0x945   : > { %p2868_p11 = pneg %p2867_p1 }
 0x946   : > { %p2874_p7 = por %p2873_p3, %p2872_p10 }
 0x948   : > { %p2875_p9 = pnand %p2874_p7, %p2868_p11 }
 0x94a   : > { %2878 = shalt.err (!%p2875_p9)
}
 0x94b   : > { %2521 = dma.vmem_to_hbm [thread:$0]  (%p3201_p5), %s3474_s30, 256, %s3472_s21, %s1993_s26, %s2959_s27, %s2959_s27, %s2960_s12  }
 0x94c PF: > { %s3575_s10 = sld [smem:[#allocation23_spill]]  ;;  %s3576_s6 = sld [smem:[#allocation25_spill]] }
 0x94d   : > { %p3578_p4 = scmp.ge.s32.totalorder %s2945_s18, 2 }
 0x952   : > { %s2046_s13 = sand.u32 1, %s3575_s10   ;;  %p3577_p0 = scmp.ne.s32.totalorder %s3576_s6, 0 }
 0x953   : > { %s2047_s20 = scalar_lea.sflag [#allocation8], %s2046_s13 }
 0x954   : > { %p2543_p13 = pnand %p3578_p4, %p3577_p0 }
 0x956   : > { %2916 = dma.done.wait (!%p2543_p13), %s2047_s20, 256  }
 0x957   : > { %2918 = vsyncadd (!%p2543_p13), %s2047_s20, 4294967040  ;;  %s2056_s8 = scalar_lea.sflag [#allocation17], %s2046_s13 }
 0x958   : > { %2920 = dma.done.wait (!%p2543_p13), %s2056_s8, 1024  }
 0x959   : > { %2922 = vsyncadd (!%p2543_p13), %s2056_s8, 4294966272  ;;  %s32_s18 = sadd.s32 1, %s2945_s18   ;;  %s3579_s13 = smov %s2929_s14 }
 0x95a   : > { %p29_p2 = scmp.ge.s32.totalorder %s32_s18, 4   ;;  %s3580_s14 = smov %s2933_s15 }
 0x95b   : > { %s3581_s15 = smov %s3210_s29  ;;  %s3582_s16 = smov %s2941_s17 }
 0x95c   : > { %s3583_s17 = smov %s3585_s9  ;;  %31 = sbr.rel (!%p29_p2) target bundleno = 15 (0xf), region = 145 }
 0x963   :  { %2061 = vsyncpa [#allocation7], 1 }
 0x964   :  { %2063 = vsyncpa [#allocation7 + $0x1], 1 }
 0x965   :  { %2064 = vsyncpa [#allocation10], 1 }
 0x966   :  { %2065 = vsyncpa [#allocation13], 1 }
 0x967   :  { %2066 = vsyncpa [#allocation8], 1 }
 0x968   :  { %2068 = vsyncpa [#allocation8 + $0x1], 1 }
 0x969   :  { %2069 = vsyncpa [#allocation17], 1 }
 0x96a   :  { %2071 = vsyncpa [#allocation17 + $0x1], 1 }

</bundles_post_ra>
